<compile_context>
chip_gen: v5e
topology: v5e:2x2
jax: 0.10.0
libtpu: 0.0.40
codegen_flags: <defaults>
</compile_context>

<pallas_src>
import functools

import jax
import jax.numpy as jnp
from jax.experimental import pallas as pl
from jax.experimental.pallas import tpu as pltpu

KH = KW = 3                                   # kernel_size = 3, SAME padding
_CENTER = (KH // 2) * KW + (KW // 2)          # tap index of (dy=1, dx=1)


# --------------------------------------------------------------------------- #
# Kernel
# --------------------------------------------------------------------------- #
def _rcab_kernel(x_ref, mask_ref, w1_ref, b1_ref, w2_ref, b2_ref,
                 wd_ref, bd_ref, wu_ref, bu_ref, out_ref, cols_ref,
                 *, H, W, nb):
    # x_ref    : (C, L)    L = nb*HW, nb images folded on the lane axis
    # mask_ref : (9, L)    per-tap SAME-padding masks (pre-cast, tiled per image)
    # w1/w2    : (C, 9C)   conv weights (bf16 on aligned C), cols ordered (dy,dx,c_in)
    # b1/b2    : (C, 1)    f32
    # wd       : (Cr, C)   squeeze weight, bd: (Cr, 1)
    # wu       : (C, Cr)   excite weight,  bu: (C, 1)
    # out_ref  : (C, L)
    # cols_ref : (9C, L)   persistent VMEM scratch, reused by both convs
    HW = H * W
    L = nb * HW
    C = x_ref.shape[0]
    x = x_ref[...]                                            # (C, L)

    def build_cols(h):
        # im2col into the reused scratch; rows ordered (dy, dx, c_in).
        for dy in range(KH):
            for dx in range(KW):
                t = dy * KW + dx
                s = (dy - 1) * W + (dx - 1)                   # flat spatial shift
                rolled = h if s == 0 else pltpu.roll(h, shift=(-s) % L, axis=1)
                if t != _CENTER:                              # centre mask is all ones
                    rolled = rolled * mask_ref[t:t + 1, :]
                cols_ref[t * C:(t + 1) * C, :] = rolled.astype(cols_ref.dtype)

    # ---- conv1 + ReLU (single K=9C matmul, bf16 operands, f32 accumulate) ----
    build_cols(x)
    h1 = jnp.dot(w1_ref[...], cols_ref[...],
                 preferred_element_type=jnp.float32) + b1_ref[...]
    h1 = jnp.maximum(h1, 0.0).astype(x.dtype)                 # (C, L)

    # ---- conv2 (same scratch, overwritten) ----
    build_cols(h1)
    h2 = jnp.dot(w2_ref[...], cols_ref[...],
                 preferred_element_type=jnp.float32) + b2_ref[...]   # (C, L) f32

    # ---- channel attention (CALayer), per folded image ----
    inv_hw = 1.0 / float(HW)
    pooled = [jnp.sum(h2[:, n * HW:(n + 1) * HW], axis=1, keepdims=True) * inv_hw
              for n in range(nb)]
    pooled = pooled[0] if nb == 1 else jnp.concatenate(pooled, axis=1)    # (C, nb)
    z = jnp.maximum(jnp.dot(wd_ref[...], pooled,
                            preferred_element_type=jnp.float32) + bd_ref[...], 0.0)
    y = jax.nn.sigmoid(jnp.dot(wu_ref[...], z,
                               preferred_element_type=jnp.float32) + bu_ref[...])  # (C, nb)

    # ---- scale + residual (lane-aligned static slices, one image at a time) ----
    for n in range(nb):
        lo = n * HW
        seg = h2[:, lo:lo + HW] * y[:, n:n + 1] + x[:, lo:lo + HW]
        out_ref[:, lo:lo + HW] = seg.astype(out_ref.dtype)


# --------------------------------------------------------------------------- #
# VMEM budgeting / batch-fold selection
# --------------------------------------------------------------------------- #
def _vmem_budget_bytes(C, L, act_bytes, mxu_bytes):
    x_blk = C * L * act_bytes
    out_blk = C * L * act_bytes
    masks = 9 * L * act_bytes
    cols = 9 * C * L * mxu_bytes                    # persistent scratch
    weights = 2 * (C * 9 * C * mxu_bytes) + 8 * C * 4
    temps = 4 * C * L * 4                           # h1/h2/rolled-tap f32 temporaries
    # x/out/mask blocks are double-buffered by the pipeline.
    return 2 * (x_blk + out_blk + masks) + cols + weights + temps


def _pick_images_per_block(N, C, HW, act_bytes, mxu_bytes):
    """Largest divisor of N whose folded working set stays small (v7x-safe)."""
    best = 1
    for nb in range(1, N + 1):
        if N % nb:
            continue
        L = nb * HW
        if L > 8 * 1024 or _vmem_budget_bytes(C, L, act_bytes, mxu_bytes) > (20 << 20):
            break
        best = nb
    return best


# --------------------------------------------------------------------------- #
# One-time parameter prep (hoisted out of the per-forward path)
# --------------------------------------------------------------------------- #
def rcab_prepare(w1_oihw, b1, w2_oihw, b2, wd_oi11, bd, wu_oi11, bu, *, H, W):
    """Pre-layouts weights (bf16 MXU operands) and builds the 9 boundary masks."""
    C = w1_oihw.shape[0]
    Cr = wd_oi11.shape[0]
    act_dtype = w1_oihw.dtype
    # bf16 cols need C to be a multiple of the bf16 sublane tile (16) so every
    # tap write into the scratch stays (16,128)-tile aligned; otherwise fall
    # back to the activation dtype (correctness preserved, perf falls back).
    mxu_dtype = jnp.bfloat16 if C % 16 == 0 else act_dtype

    def to_mat(w):  # OIHW -> (C_out, (dy,dx,c_in)) matching the cols row order
        return jnp.transpose(w, (0, 2, 3, 1)).reshape(C, KH * KW * C).astype(mxu_dtype)

    ii, jj = jnp.meshgrid(jnp.arange(H), jnp.arange(W), indexing="ij")
    masks = jnp.stack([
        (((ii + dy - 1) >= 0) & ((ii + dy - 1) < H) &
         ((jj + dx - 1) >= 0) & ((jj + dx - 1) < W)).reshape(H * W)
        for dy in range(KH) for dx in range(KW)
    ]).astype(act_dtype)                                       # (9, HW), pre-cast

    return dict(
        w1=to_mat(w1_oihw), b1=b1.reshape(C, 1).astype(jnp.float32),
        w2=to_mat(w2_oihw), b2=b2.reshape(C, 1).astype(jnp.float32),
        wd=wd_oi11[:, :, 0, 0].astype(jnp.float32),            # (Cr, C)
        bd=bd.reshape(Cr, 1).astype(jnp.float32),
        wu=wu_oi11[:, :, 0, 0].astype(jnp.float32),             # (C, Cr)
        bu=bu.reshape(C, 1).astype(jnp.float32),
        masks=masks,
    )


# --------------------------------------------------------------------------- #
# Forward
# --------------------------------------------------------------------------- #
def rcab_forward(x_nchw, params, *, images_per_block=None):
    """RCAB forward. x is NCHW (PyTorch convention); params from rcab_prepare."""
    N, C, H, W = x_nchw.shape
    HW = H * W
    assert HW % 128 == 0, "H*W must be a multiple of 128 for lane-dense layout"
    assert C % 8 == 0, "C must be a multiple of 8 (f32 sublane tile)"
    # TODO(synk): pad C / HW instead of asserting for arbitrary shapes.

    act_dtype = x_nchw.dtype
    mxu_dtype = params["w1"].dtype
    act_bytes = jnp.dtype(act_dtype).itemsize
    mxu_bytes = jnp.dtype(mxu_dtype).itemsize

    nb = images_per_block or _pick_images_per_block(N, C, HW, act_bytes, mxu_bytes)
    assert N % nb == 0
    G = N // nb
    L = nb * HW

    budget = _vmem_budget_bytes(C, L, act_bytes, mxu_bytes)
    assert budget <= (60 << 20), (
        "TODO(synk): working set exceeds v7x per-TC VMEM; add a row-stripe "
        "grid axis with a 1-row halo")
    vmem_limit = int(min(max(2 * budget, 16 << 20), 64 << 20))

    # ---- layout plumbing (cheap JAX glue; fused under jit) ----
    x_fold = x_nchw.reshape(G, nb, C, HW).transpose(0, 2, 1, 3).reshape(G, C, L)
    masks_t = jnp.tile(params["masks"], (1, nb))               # (9, L)

    def full(a):
        return pl.BlockSpec(a.shape, lambda g: (0,) * a.ndim)

    kernel = functools.partial(_rcab_kernel, H=H, W=W, nb=nb)

    out_fold = pl.pallas_call(
        kernel,
        out_shape=jax.ShapeDtypeStruct((G, C, L), act_dtype),
        grid_spec=pltpu.PrefetchScalarGridSpec(
            num_scalar_prefetch=0,
            grid=(G,),
            in_specs=[
                pl.BlockSpec((None, C, L), lambda g: (g, 0, 0)),   # x (batch dim squeezed)
                full(masks_t),
                full(params["w1"]), full(params["b1"]),
                full(params["w2"]), full(params["b2"]),
                full(params["wd"]), full(params["bd"]),
                full(params["wu"]), full(params["bu"]),
            ],
            out_specs=pl.BlockSpec((None, C, L), lambda g: (g, 0, 0)),
            scratch_shapes=[pltpu.VMEM((KH * KW * C, L), mxu_dtype)],  # reused im2col
        ),
        compiler_params=pltpu.CompilerParams(
            dimension_semantics=("parallel",),      # batch-groups split across TCs
            vmem_limit_bytes=vmem_limit,
        ),
    )(x_fold, masks_t, params["w1"], params["b1"], params["w2"], params["b2"],
      params["wd"], params["bd"], params["wu"], params["bu"])

    return out_fold.reshape(G, C, nb, HW).transpose(0, 2, 1, 3).reshape(N, C, H, W)


# --------------------------------------------------------------------------- #
# Pure-JAX reference (NCHW, matches PyTorch semantics)
# --------------------------------------------------------------------------- #
def rcab_reference(x, w1, b1, w2, b2, wd, bd, wu, bu):
    dn = ("NCHW", "OIHW", "NCHW")
    h = jax.lax.conv_general_dilated(x, w1, (1, 1), "SAME",
                                     dimension_numbers=dn) + b1[None, :, None, None]
    h = jnp.maximum(h, 0.0)
    h = jax.lax.conv_general_dilated(h, w2, (1, 1), "SAME",
                                     dimension_numbers=dn) + b2[None, :, None, None]
    pooled = jnp.mean(h, axis=(2, 3))                                    # (N, C)
    y = jnp.maximum(pooled @ wd[:, :, 0, 0].T + bd, 0.0)
    y = jax.nn.sigmoid(y @ wu[:, :, 0, 0].T + bu)
    return h * y[:, :, None, None] + x


if __name__ == "__main__":
    # Small RCAB: n_feat=16, kernel_size=3, reduction=4, batch=2, spatial 16x16
    N, C, H, W = 2, 16, 16, 16
    reduction = 4
    Cr = C // reduction

    keys = jax.random.split(jax.random.PRNGKey(0), 9)
    x = jax.random.normal(keys[0], (N, C, H, W), jnp.float32)

    # deterministic synthetic parameters (PyTorch OIHW layout)
    w1 = jax.random.normal(keys[1], (C, C, KH, KW), jnp.float32) * 0.05
    b1 = jax.random.normal(keys[2], (C,), jnp.float32) * 0.05
    w2 = jax.random.normal(keys[3], (C, C, KH, KW), jnp.float32) * 0.05
    b2 = jax.random.normal(keys[4], (C,), jnp.float32) * 0.05
    wd = jax.random.normal(keys[5], (Cr, C, 1, 1), jnp.float32) * 0.10
    bd = jax.random.normal(keys[6], (Cr,), jnp.float32) * 0.10
    wu = jax.random.normal(keys[7], (C, Cr, 1, 1), jnp.float32) * 0.10
    bu = jax.random.normal(keys[8], (C,), jnp.float32) * 0.10

    params = rcab_prepare(w1, b1, w2, b2, wd, bd, wu, bu, H=H, W=W)
    fwd = jax.jit(rcab_forward)

    out = fwd(x, params)
    out = jax.block_until_ready(out)

    ref = rcab_reference(x, w1, b1, w2, b2, wd, bd, wu, bu)
    assert out.shape == ref.shape == (N, C, H, W)
    # bf16 MXU operands -> slightly looser tolerance than pure-f32 accumulation
    assert jnp.allclose(out, ref, rtol=2e-2, atol=2e-2), (
        float(jnp.max(jnp.abs(out - ref))))

    print("KERNEL_OK")
</pallas_src>

<mosaic_0001>
module attributes {stable_mosaic.version = 11 : i64} {
  func.func @_rcab_kernel(%arg0: i32, %arg1: memref<1x16x512xf32, #tpu.memory_space<vmem>>, %arg2: memref<9x512xf32, #tpu.memory_space<vmem>>, %arg3: memref<16x144xbf16, #tpu.memory_space<vmem>>, %arg4: memref<16x1xf32, #tpu.memory_space<vmem>>, %arg5: memref<16x144xbf16, #tpu.memory_space<vmem>>, %arg6: memref<16x1xf32, #tpu.memory_space<vmem>>, %arg7: memref<4x16xf32, #tpu.memory_space<vmem>>, %arg8: memref<4x1xf32, #tpu.memory_space<vmem>>, %arg9: memref<16x4xf32, #tpu.memory_space<vmem>>, %arg10: memref<16x1xf32, #tpu.memory_space<vmem>>, %arg11: memref<1x16x512xf32, #tpu.memory_space<vmem>>, %arg12: memref<144x512xbf16, #tpu.memory_space<vmem>>) attributes {dimension_semantics = [#tpu.dimension_semantics<parallel>], iteration_bounds = array<i64: 1>, scalar_prefetch = 0 : i64, scratch_operands = 1 : i64, tpu.core_type = #tpu.core_type<tc>, window_params = [{transform_indices = @transform_0, window_bounds = array<i64: 1, 16, 512>}, {pipeline_mode = #tpu.pipeline_mode<synchronous>, transform_indices = @transform_1, window_bounds = array<i64: 9, 512>}, {pipeline_mode = #tpu.pipeline_mode<synchronous>, transform_indices = @transform_2, window_bounds = array<i64: 16, 144>}, {pipeline_mode = #tpu.pipeline_mode<synchronous>, transform_indices = @transform_3, window_bounds = array<i64: 16, 1>}, {pipeline_mode = #tpu.pipeline_mode<synchronous>, transform_indices = @transform_4, window_bounds = array<i64: 16, 144>}, {pipeline_mode = #tpu.pipeline_mode<synchronous>, transform_indices = @transform_5, window_bounds = array<i64: 16, 1>}, {pipeline_mode = #tpu.pipeline_mode<synchronous>, transform_indices = @transform_6, window_bounds = array<i64: 4, 16>}, {pipeline_mode = #tpu.pipeline_mode<synchronous>, transform_indices = @transform_7, window_bounds = array<i64: 4, 1>}, {pipeline_mode = #tpu.pipeline_mode<synchronous>, transform_indices = @transform_8, window_bounds = array<i64: 16, 4>}, {pipeline_mode = #tpu.pipeline_mode<synchronous>, transform_indices = @transform_9, window_bounds = array<i64: 16, 1>}, {transform_indices = @transform_10, window_bounds = array<i64: 1, 16, 512>}]} {
    %c0 = arith.constant 0 : index
    %c0_0 = arith.constant 0 : index
    %c0_1 = arith.constant 0 : index
    %0 = vector.load %arg1[%c0, %c0_0, %c0_1] : memref<1x16x512xf32, #tpu.memory_space<vmem>>, vector<1x16x512xf32>
    %1 = vector.shape_cast %0 : vector<1x16x512xf32> to vector<16x512xf32>
    %c17_i32 = arith.constant 17 : i32
    %2 = tpu.dynamic_rotate %1 by %c17_i32 dim 1 : vector<16x512xf32>, i32 -> vector<16x512xf32>
    %c0_2 = arith.constant 0 : index
    %c0_3 = arith.constant 0 : index
    %3 = vector.load %arg2[%c0_2, %c0_3] : memref<9x512xf32, #tpu.memory_space<vmem>>, vector<1x512xf32>
    %4 = vector.broadcast %3 : vector<1x512xf32> to vector<16x512xf32>
    %5 = arith.mulf %2, %4 : vector<16x512xf32>
    %6 = arith.truncf %5 : vector<16x512xf32> to vector<16x512xbf16>
    %c0_4 = arith.constant 0 : index
    %c0_5 = arith.constant 0 : index
    %7 = vector.load %arg12[%c0_4, %c0_5] : memref<144x512xbf16, #tpu.memory_space<vmem>>, vector<16x512xbf16>
    tpu.vector_store %arg12[%c0_4, %c0_5], %6 {strides = array<i32>} : memref<144x512xbf16, #tpu.memory_space<vmem>>, vector<16x512xbf16>,
    %c16_i32 = arith.constant 16 : i32
    %8 = tpu.dynamic_rotate %1 by %c16_i32 dim 1 : vector<16x512xf32>, i32 -> vector<16x512xf32>
    %c1 = arith.constant 1 : index
    %c0_6 = arith.constant 0 : index
    %9 = vector.load %arg2[%c1, %c0_6] : memref<9x512xf32, #tpu.memory_space<vmem>>, vector<1x512xf32>
    %10 = vector.broadcast %9 : vector<1x512xf32> to vector<16x512xf32>
    %11 = arith.mulf %8, %10 : vector<16x512xf32>
    %12 = arith.truncf %11 : vector<16x512xf32> to vector<16x512xbf16>
    %c16 = arith.constant 16 : index
    %c0_7 = arith.constant 0 : index
    %13 = vector.load %arg12[%c16, %c0_7] : memref<144x512xbf16, #tpu.memory_space<vmem>>, vector<16x512xbf16>
    tpu.vector_store %arg12[%c16, %c0_7], %12 {strides = array<i32>} : memref<144x512xbf16, #tpu.memory_space<vmem>>, vector<16x512xbf16>,
    %c15_i32 = arith.constant 15 : i32
    %14 = tpu.dynamic_rotate %1 by %c15_i32 dim 1 : vector<16x512xf32>, i32 -> vector<16x512xf32>
    %c2 = arith.constant 2 : index
    %c0_8 = arith.constant 0 : index
    %15 = vector.load %arg2[%c2, %c0_8] : memref<9x512xf32, #tpu.memory_space<vmem>>, vector<1x512xf32>
    %16 = vector.broadcast %15 : vector<1x512xf32> to vector<16x512xf32>
    %17 = arith.mulf %14, %16 : vector<16x512xf32>
    %18 = arith.truncf %17 : vector<16x512xf32> to vector<16x512xbf16>
    %c32 = arith.constant 32 : index
    %c0_9 = arith.constant 0 : index
    %19 = vector.load %arg12[%c32, %c0_9] : memref<144x512xbf16, #tpu.memory_space<vmem>>, vector<16x512xbf16>
    tpu.vector_store %arg12[%c32, %c0_9], %18 {strides = array<i32>} : memref<144x512xbf16, #tpu.memory_space<vmem>>, vector<16x512xbf16>,
    %c1_i32 = arith.constant 1 : i32
    %20 = tpu.dynamic_rotate %1 by %c1_i32 dim 1 : vector<16x512xf32>, i32 -> vector<16x512xf32>
    %c3 = arith.constant 3 : index
    %c0_10 = arith.constant 0 : index
    %21 = vector.load %arg2[%c3, %c0_10] : memref<9x512xf32, #tpu.memory_space<vmem>>, vector<1x512xf32>
    %22 = vector.broadcast %21 : vector<1x512xf32> to vector<16x512xf32>
    %23 = arith.mulf %20, %22 : vector<16x512xf32>
    %24 = arith.truncf %23 : vector<16x512xf32> to vector<16x512xbf16>
    %c48 = arith.constant 48 : index
    %c0_11 = arith.constant 0 : index
    %25 = vector.load %arg12[%c48, %c0_11] : memref<144x512xbf16, #tpu.memory_space<vmem>>, vector<16x512xbf16>
    tpu.vector_store %arg12[%c48, %c0_11], %24 {strides = array<i32>} : memref<144x512xbf16, #tpu.memory_space<vmem>>, vector<16x512xbf16>,
    %26 = arith.truncf %1 : vector<16x512xf32> to vector<16x512xbf16>
    %c64 = arith.constant 64 : index
    %c0_12 = arith.constant 0 : index
    %27 = vector.load %arg12[%c64, %c0_12] : memref<144x512xbf16, #tpu.memory_space<vmem>>, vector<16x512xbf16>
    tpu.vector_store %arg12[%c64, %c0_12], %26 {strides = array<i32>} : memref<144x512xbf16, #tpu.memory_space<vmem>>, vector<16x512xbf16>,
    %c511_i32 = arith.constant 511 : i32
    %28 = tpu.dynamic_rotate %1 by %c511_i32 dim 1 : vector<16x512xf32>, i32 -> vector<16x512xf32>
    %c5 = arith.constant 5 : index
    %c0_13 = arith.constant 0 : index
    %29 = vector.load %arg2[%c5, %c0_13] : memref<9x512xf32, #tpu.memory_space<vmem>>, vector<1x512xf32>
    %30 = vector.broadcast %29 : vector<1x512xf32> to vector<16x512xf32>
    %31 = arith.mulf %28, %30 : vector<16x512xf32>
    %32 = arith.truncf %31 : vector<16x512xf32> to vector<16x512xbf16>
    %c80 = arith.constant 80 : index
    %c0_14 = arith.constant 0 : index
    %33 = vector.load %arg12[%c80, %c0_14] : memref<144x512xbf16, #tpu.memory_space<vmem>>, vector<16x512xbf16>
    tpu.vector_store %arg12[%c80, %c0_14], %32 {strides = array<i32>} : memref<144x512xbf16, #tpu.memory_space<vmem>>, vector<16x512xbf16>,
    %c497_i32 = arith.constant 497 : i32
    %34 = tpu.dynamic_rotate %1 by %c497_i32 dim 1 : vector<16x512xf32>, i32 -> vector<16x512xf32>
    %c6 = arith.constant 6 : index
    %c0_15 = arith.constant 0 : index
    %35 = vector.load %arg2[%c6, %c0_15] : memref<9x512xf32, #tpu.memory_space<vmem>>, vector<1x512xf32>
    %36 = vector.broadcast %35 : vector<1x512xf32> to vector<16x512xf32>
    %37 = arith.mulf %34, %36 : vector<16x512xf32>
    %38 = arith.truncf %37 : vector<16x512xf32> to vector<16x512xbf16>
    %c96 = arith.constant 96 : index
    %c0_16 = arith.constant 0 : index
    %39 = vector.load %arg12[%c96, %c0_16] : memref<144x512xbf16, #tpu.memory_space<vmem>>, vector<16x512xbf16>
    tpu.vector_store %arg12[%c96, %c0_16], %38 {strides = array<i32>} : memref<144x512xbf16, #tpu.memory_space<vmem>>, vector<16x512xbf16>,
    %c496_i32 = arith.constant 496 : i32
    %40 = tpu.dynamic_rotate %1 by %c496_i32 dim 1 : vector<16x512xf32>, i32 -> vector<16x512xf32>
    %c7 = arith.constant 7 : index
    %c0_17 = arith.constant 0 : index
    %41 = vector.load %arg2[%c7, %c0_17] : memref<9x512xf32, #tpu.memory_space<vmem>>, vector<1x512xf32>
    %42 = vector.broadcast %41 : vector<1x512xf32> to vector<16x512xf32>
    %43 = arith.mulf %40, %42 : vector<16x512xf32>
    %44 = arith.truncf %43 : vector<16x512xf32> to vector<16x512xbf16>
    %c112 = arith.constant 112 : index
    %c0_18 = arith.constant 0 : index
    %45 = vector.load %arg12[%c112, %c0_18] : memref<144x512xbf16, #tpu.memory_space<vmem>>, vector<16x512xbf16>
    tpu.vector_store %arg12[%c112, %c0_18], %44 {strides = array<i32>} : memref<144x512xbf16, #tpu.memory_space<vmem>>, vector<16x512xbf16>,
    %c495_i32 = arith.constant 495 : i32
    %46 = tpu.dynamic_rotate %1 by %c495_i32 dim 1 : vector<16x512xf32>, i32 -> vector<16x512xf32>
    %c8 = arith.constant 8 : index
    %c0_19 = arith.constant 0 : index
    %47 = vector.load %arg2[%c8, %c0_19] : memref<9x512xf32, #tpu.memory_space<vmem>>, vector<1x512xf32>
    %48 = vector.broadcast %47 : vector<1x512xf32> to vector<16x512xf32>
    %49 = arith.mulf %46, %48 : vector<16x512xf32>
    %50 = arith.truncf %49 : vector<16x512xf32> to vector<16x512xbf16>
    %c128 = arith.constant 128 : index
    %c0_20 = arith.constant 0 : index
    %51 = vector.load %arg12[%c128, %c0_20] : memref<144x512xbf16, #tpu.memory_space<vmem>>, vector<16x512xbf16>
    tpu.vector_store %arg12[%c128, %c0_20], %50 {strides = array<i32>} : memref<144x512xbf16, #tpu.memory_space<vmem>>, vector<16x512xbf16>,
    %c0_21 = arith.constant 0 : index
    %c0_22 = arith.constant 0 : index
    %52 = vector.load %arg3[%c0_21, %c0_22] : memref<16x144xbf16, #tpu.memory_space<vmem>>, vector<16x144xbf16>
    %c0_23 = arith.constant 0 : index
    %c0_24 = arith.constant 0 : index
    %53 = vector.load %arg12[%c0_23, %c0_24] : memref<144x512xbf16, #tpu.memory_space<vmem>>, vector<144x512xbf16>
    %cst = arith.constant dense<0.000000e+00> : vector<16x512xf32>
    %54 = tpu.matmul %52, %53, %cst {dimension_numbers = #tpu.dot_dimension_numbers<[1], [0], [0], [1], [0, 0, 1, 1], [], []>} : vector<16x144xbf16>, vector<144x512xbf16>, vector<16x512xf32> -> vector<16x512xf32>
    %c0_25 = arith.constant 0 : index
    %c0_26 = arith.constant 0 : index
    %55 = vector.load %arg4[%c0_25, %c0_26] : memref<16x1xf32, #tpu.memory_space<vmem>>, vector<16x1xf32>
    %56 = vector.broadcast %55 : vector<16x1xf32> to vector<16x512xf32>
    %57 = arith.addf %54, %56 : vector<16x512xf32>
    %cst_27 = arith.constant 0.000000e+00 : f32
    %58 = vector.broadcast %cst_27 : f32 to vector<16x512xf32>
    %59 = arith.maximumf %57, %58 : vector<16x512xf32>
    %c17_i32_28 = arith.constant 17 : i32
    %60 = tpu.dynamic_rotate %59 by %c17_i32_28 dim 1 : vector<16x512xf32>, i32 -> vector<16x512xf32>
    %c0_29 = arith.constant 0 : index
    %c0_30 = arith.constant 0 : index
    %61 = vector.load %arg2[%c0_29, %c0_30] : memref<9x512xf32, #tpu.memory_space<vmem>>, vector<1x512xf32>
    %62 = vector.broadcast %61 : vector<1x512xf32> to vector<16x512xf32>
    %63 = arith.mulf %60, %62 : vector<16x512xf32>
    %64 = arith.truncf %63 : vector<16x512xf32> to vector<16x512xbf16>
    %c0_31 = arith.constant 0 : index
    %c0_32 = arith.constant 0 : index
    %65 = vector.load %arg12[%c0_31, %c0_32] : memref<144x512xbf16, #tpu.memory_space<vmem>>, vector<16x512xbf16>
    tpu.vector_store %arg12[%c0_31, %c0_32], %64 {strides = array<i32>} : memref<144x512xbf16, #tpu.memory_space<vmem>>, vector<16x512xbf16>,
    %c16_i32_33 = arith.constant 16 : i32
    %66 = tpu.dynamic_rotate %59 by %c16_i32_33 dim 1 : vector<16x512xf32>, i32 -> vector<16x512xf32>
    %c1_34 = arith.constant 1 : index
    %c0_35 = arith.constant 0 : index
    %67 = vector.load %arg2[%c1_34, %c0_35] : memref<9x512xf32, #tpu.memory_space<vmem>>, vector<1x512xf32>
    %68 = vector.broadcast %67 : vector<1x512xf32> to vector<16x512xf32>
    %69 = arith.mulf %66, %68 : vector<16x512xf32>
    %70 = arith.truncf %69 : vector<16x512xf32> to vector<16x512xbf16>
    %c16_36 = arith.constant 16 : index
    %c0_37 = arith.constant 0 : index
    %71 = vector.load %arg12[%c16_36, %c0_37] : memref<144x512xbf16, #tpu.memory_space<vmem>>, vector<16x512xbf16>
    tpu.vector_store %arg12[%c16_36, %c0_37], %70 {strides = array<i32>} : memref<144x512xbf16, #tpu.memory_space<vmem>>, vector<16x512xbf16>,
    %c15_i32_38 = arith.constant 15 : i32
    %72 = tpu.dynamic_rotate %59 by %c15_i32_38 dim 1 : vector<16x512xf32>, i32 -> vector<16x512xf32>
    %c2_39 = arith.constant 2 : index
    %c0_40 = arith.constant 0 : index
    %73 = vector.load %arg2[%c2_39, %c0_40] : memref<9x512xf32, #tpu.memory_space<vmem>>, vector<1x512xf32>
    %74 = vector.broadcast %73 : vector<1x512xf32> to vector<16x512xf32>
    %75 = arith.mulf %72, %74 : vector<16x512xf32>
    %76 = arith.truncf %75 : vector<16x512xf32> to vector<16x512xbf16>
    %c32_41 = arith.constant 32 : index
    %c0_42 = arith.constant 0 : index
    %77 = vector.load %arg12[%c32_41, %c0_42] : memref<144x512xbf16, #tpu.memory_space<vmem>>, vector<16x512xbf16>
    tpu.vector_store %arg12[%c32_41, %c0_42], %76 {strides = array<i32>} : memref<144x512xbf16, #tpu.memory_space<vmem>>, vector<16x512xbf16>,
    %c1_i32_43 = arith.constant 1 : i32
    %78 = tpu.dynamic_rotate %59 by %c1_i32_43 dim 1 : vector<16x512xf32>, i32 -> vector<16x512xf32>
    %c3_44 = arith.constant 3 : index
    %c0_45 = arith.constant 0 : index
    %79 = vector.load %arg2[%c3_44, %c0_45] : memref<9x512xf32, #tpu.memory_space<vmem>>, vector<1x512xf32>
    %80 = vector.broadcast %79 : vector<1x512xf32> to vector<16x512xf32>
    %81 = arith.mulf %78, %80 : vector<16x512xf32>
    %82 = arith.truncf %81 : vector<16x512xf32> to vector<16x512xbf16>
    %c48_46 = arith.constant 48 : index
    %c0_47 = arith.constant 0 : index
    %83 = vector.load %arg12[%c48_46, %c0_47] : memref<144x512xbf16, #tpu.memory_space<vmem>>, vector<16x512xbf16>
    tpu.vector_store %arg12[%c48_46, %c0_47], %82 {strides = array<i32>} : memref<144x512xbf16, #tpu.memory_space<vmem>>, vector<16x512xbf16>,
    %84 = arith.truncf %59 : vector<16x512xf32> to vector<16x512xbf16>
    %c64_48 = arith.constant 64 : index
    %c0_49 = arith.constant 0 : index
    %85 = vector.load %arg12[%c64_48, %c0_49] : memref<144x512xbf16, #tpu.memory_space<vmem>>, vector<16x512xbf16>
    tpu.vector_store %arg12[%c64_48, %c0_49], %84 {strides = array<i32>} : memref<144x512xbf16, #tpu.memory_space<vmem>>, vector<16x512xbf16>,
    %c511_i32_50 = arith.constant 511 : i32
    %86 = tpu.dynamic_rotate %59 by %c511_i32_50 dim 1 : vector<16x512xf32>, i32 -> vector<16x512xf32>
    %c5_51 = arith.constant 5 : index
    %c0_52 = arith.constant 0 : index
    %87 = vector.load %arg2[%c5_51, %c0_52] : memref<9x512xf32, #tpu.memory_space<vmem>>, vector<1x512xf32>
    %88 = vector.broadcast %87 : vector<1x512xf32> to vector<16x512xf32>
    %89 = arith.mulf %86, %88 : vector<16x512xf32>
    %90 = arith.truncf %89 : vector<16x512xf32> to vector<16x512xbf16>
    %c80_53 = arith.constant 80 : index
    %c0_54 = arith.constant 0 : index
    %91 = vector.load %arg12[%c80_53, %c0_54] : memref<144x512xbf16, #tpu.memory_space<vmem>>, vector<16x512xbf16>
    tpu.vector_store %arg12[%c80_53, %c0_54], %90 {strides = array<i32>} : memref<144x512xbf16, #tpu.memory_space<vmem>>, vector<16x512xbf16>,
    %c497_i32_55 = arith.constant 497 : i32
    %92 = tpu.dynamic_rotate %59 by %c497_i32_55 dim 1 : vector<16x512xf32>, i32 -> vector<16x512xf32>
    %c6_56 = arith.constant 6 : index
    %c0_57 = arith.constant 0 : index
    %93 = vector.load %arg2[%c6_56, %c0_57] : memref<9x512xf32, #tpu.memory_space<vmem>>, vector<1x512xf32>
    %94 = vector.broadcast %93 : vector<1x512xf32> to vector<16x512xf32>
    %95 = arith.mulf %92, %94 : vector<16x512xf32>
    %96 = arith.truncf %95 : vector<16x512xf32> to vector<16x512xbf16>
    %c96_58 = arith.constant 96 : index
    %c0_59 = arith.constant 0 : index
    %97 = vector.load %arg12[%c96_58, %c0_59] : memref<144x512xbf16, #tpu.memory_space<vmem>>, vector<16x512xbf16>
    tpu.vector_store %arg12[%c96_58, %c0_59], %96 {strides = array<i32>} : memref<144x512xbf16, #tpu.memory_space<vmem>>, vector<16x512xbf16>,
    %c496_i32_60 = arith.constant 496 : i32
    %98 = tpu.dynamic_rotate %59 by %c496_i32_60 dim 1 : vector<16x512xf32>, i32 -> vector<16x512xf32>
    %c7_61 = arith.constant 7 : index
    %c0_62 = arith.constant 0 : index
    %99 = vector.load %arg2[%c7_61, %c0_62] : memref<9x512xf32, #tpu.memory_space<vmem>>, vector<1x512xf32>
    %100 = vector.broadcast %99 : vector<1x512xf32> to vector<16x512xf32>
    %101 = arith.mulf %98, %100 : vector<16x512xf32>
    %102 = arith.truncf %101 : vector<16x512xf32> to vector<16x512xbf16>
    %c112_63 = arith.constant 112 : index
    %c0_64 = arith.constant 0 : index
    %103 = vector.load %arg12[%c112_63, %c0_64] : memref<144x512xbf16, #tpu.memory_space<vmem>>, vector<16x512xbf16>
    tpu.vector_store %arg12[%c112_63, %c0_64], %102 {strides = array<i32>} : memref<144x512xbf16, #tpu.memory_space<vmem>>, vector<16x512xbf16>,
    %c495_i32_65 = arith.constant 495 : i32
    %104 = tpu.dynamic_rotate %59 by %c495_i32_65 dim 1 : vector<16x512xf32>, i32 -> vector<16x512xf32>
    %c8_66 = arith.constant 8 : index
    %c0_67 = arith.constant 0 : index
    %105 = vector.load %arg2[%c8_66, %c0_67] : memref<9x512xf32, #tpu.memory_space<vmem>>, vector<1x512xf32>
    %106 = vector.broadcast %105 : vector<1x512xf32> to vector<16x512xf32>
    %107 = arith.mulf %104, %106 : vector<16x512xf32>
    %108 = arith.truncf %107 : vector<16x512xf32> to vector<16x512xbf16>
    %c128_68 = arith.constant 128 : index
    %c0_69 = arith.constant 0 : index
    %109 = vector.load %arg12[%c128_68, %c0_69] : memref<144x512xbf16, #tpu.memory_space<vmem>>, vector<16x512xbf16>
    tpu.vector_store %arg12[%c128_68, %c0_69], %108 {strides = array<i32>} : memref<144x512xbf16, #tpu.memory_space<vmem>>, vector<16x512xbf16>,
    %c0_70 = arith.constant 0 : index
    %c0_71 = arith.constant 0 : index
    %110 = vector.load %arg5[%c0_70, %c0_71] : memref<16x144xbf16, #tpu.memory_space<vmem>>, vector<16x144xbf16>
    %c0_72 = arith.constant 0 : index
    %c0_73 = arith.constant 0 : index
    %111 = vector.load %arg12[%c0_72, %c0_73] : memref<144x512xbf16, #tpu.memory_space<vmem>>, vector<144x512xbf16>
    %cst_74 = arith.constant dense<0.000000e+00> : vector<16x512xf32>
    %112 = tpu.matmul %110, %111, %cst_74 {dimension_numbers = #tpu.dot_dimension_numbers<[1], [0], [0], [1], [0, 0, 1, 1], [], []>} : vector<16x144xbf16>, vector<144x512xbf16>, vector<16x512xf32> -> vector<16x512xf32>
    %c0_75 = arith.constant 0 : index
    %c0_76 = arith.constant 0 : index
    %113 = vector.load %arg6[%c0_75, %c0_76] : memref<16x1xf32, #tpu.memory_space<vmem>>, vector<16x1xf32>
    %114 = vector.broadcast %113 : vector<16x1xf32> to vector<16x512xf32>
    %115 = arith.addf %112, %114 : vector<16x512xf32>
    %116 = vector.extract_strided_slice %115 {offsets = [0, 0], sizes = [16, 256], strides = [1, 1]} : vector<16x512xf32> to vector<16x256xf32>
    %cst_77 = arith.constant dense<0.000000e+00> : vector<16xf32>
    %117 = vector.multi_reduction <add>, %116, %cst_77 [1] : vector<16x256xf32> to vector<16xf32>
    %118 = vector.shape_cast %117 : vector<16xf32> to vector<16x1xf32>
    %cst_78 = arith.constant 3.906250e-03 : f32
    %119 = vector.broadcast %cst_78 : f32 to vector<16x1xf32>
    %120 = arith.mulf %118, %119 : vector<16x1xf32>
    %121 = vector.extract_strided_slice %115 {offsets = [0, 256], sizes = [16, 256], strides = [1, 1]} : vector<16x512xf32> to vector<16x256xf32>
    %cst_79 = arith.constant dense<0.000000e+00> : vector<16xf32>
    %122 = vector.multi_reduction <add>, %121, %cst_79 [1] : vector<16x256xf32> to vector<16xf32>
    %123 = vector.shape_cast %122 : vector<16xf32> to vector<16x1xf32>
    %cst_80 = arith.constant 3.906250e-03 : f32
    %124 = vector.broadcast %cst_80 : f32 to vector<16x1xf32>
    %125 = arith.mulf %123, %124 : vector<16x1xf32>
    %126 = tpu.concatenate %120, %125 in 1 : vector<16x1xf32>, vector<16x1xf32> -> vector<16x2xf32>
    %c0_81 = arith.constant 0 : index
    %c0_82 = arith.constant 0 : index
    %127 = vector.load %arg7[%c0_81, %c0_82] : memref<4x16xf32, #tpu.memory_space<vmem>>, vector<4x16xf32>
    %cst_83 = arith.constant dense<0.000000e+00> : vector<4x2xf32>
    %128 = tpu.matmul %127, %126, %cst_83 {dimension_numbers = #tpu.dot_dimension_numbers<[1], [0], [0], [1], [0, 0, 1, 1], [], []>} : vector<4x16xf32>, vector<16x2xf32>, vector<4x2xf32> -> vector<4x2xf32>
    %c0_84 = arith.constant 0 : index
    %c0_85 = arith.constant 0 : index
    %129 = vector.load %arg8[%c0_84, %c0_85] : memref<4x1xf32, #tpu.memory_space<vmem>>, vector<4x1xf32>
    %130 = vector.broadcast %129 : vector<4x1xf32> to vector<4x2xf32>
    %131 = arith.addf %128, %130 : vector<4x2xf32>
    %cst_86 = arith.constant 0.000000e+00 : f32
    %132 = vector.broadcast %cst_86 : f32 to vector<4x2xf32>
    %133 = arith.maximumf %131, %132 : vector<4x2xf32>
    %c0_87 = arith.constant 0 : index
    %c0_88 = arith.constant 0 : index
    %134 = vector.load %arg9[%c0_87, %c0_88] : memref<16x4xf32, #tpu.memory_space<vmem>>, vector<16x4xf32>
    %cst_89 = arith.constant dense<0.000000e+00> : vector<16x2xf32>
    %135 = tpu.matmul %134, %133, %cst_89 {dimension_numbers = #tpu.dot_dimension_numbers<[1], [0], [0], [1], [0, 0, 1, 1], [], []>} : vector<16x4xf32>, vector<4x2xf32>, vector<16x2xf32> -> vector<16x2xf32>
    %c0_90 = arith.constant 0 : index
    %c0_91 = arith.constant 0 : index
    %136 = vector.load %arg10[%c0_90, %c0_91] : memref<16x1xf32, #tpu.memory_space<vmem>>, vector<16x1xf32>
    %137 = vector.broadcast %136 : vector<16x1xf32> to vector<16x2xf32>
    %138 = arith.addf %135, %137 : vector<16x2xf32>
    %139 = arith.negf %138 : vector<16x2xf32>
    %140 = math.exp %139 : vector<16x2xf32>
    %cst_92 = arith.constant 1.000000e+00 : f32
    %141 = vector.broadcast %cst_92 : f32 to vector<16x2xf32>
    %142 = arith.addf %141, %140 : vector<16x2xf32>
    %143 = arith.divf %141, %142 : vector<16x2xf32>
    %144 = vector.extract_strided_slice %115 {offsets = [0, 0], sizes = [16, 256], strides = [1, 1]} : vector<16x512xf32> to vector<16x256xf32>
    %145 = vector.extract_strided_slice %143 {offsets = [0, 0], sizes = [16, 1], strides = [1, 1]} : vector<16x2xf32> to vector<16x1xf32>
    %146 = vector.broadcast %145 : vector<16x1xf32> to vector<16x256xf32>
    %147 = arith.mulf %144, %146 : vector<16x256xf32>
    %148 = vector.extract_strided_slice %1 {offsets = [0, 0], sizes = [16, 256], strides = [1, 1]} : vector<16x512xf32> to vector<16x256xf32>
    %149 = arith.addf %147, %148 : vector<16x256xf32>
    %c0_93 = arith.constant 0 : index
    %c0_94 = arith.constant 0 : index
    %c0_95 = arith.constant 0 : index
    %150 = vector.load %arg11[%c0_93, %c0_94, %c0_95] : memref<1x16x512xf32, #tpu.memory_space<vmem>>, vector<1x16x256xf32>
    %151 = vector.shape_cast %150 : vector<1x16x256xf32> to vector<16x256xf32>
    %152 = vector.shape_cast %149 : vector<16x256xf32> to vector<1x16x256xf32>
    tpu.vector_store %arg11[%c0_93, %c0_94, %c0_95], %152 {strides = array<i32>} : memref<1x16x512xf32, #tpu.memory_space<vmem>>, vector<1x16x256xf32>,
    %153 = vector.extract_strided_slice %115 {offsets = [0, 256], sizes = [16, 256], strides = [1, 1]} : vector<16x512xf32> to vector<16x256xf32>
    %154 = vector.extract_strided_slice %143 {offsets = [0, 1], sizes = [16, 1], strides = [1, 1]} : vector<16x2xf32> to vector<16x1xf32>
    %155 = vector.broadcast %154 : vector<16x1xf32> to vector<16x256xf32>
    %156 = arith.mulf %153, %155 : vector<16x256xf32>
    %157 = vector.extract_strided_slice %1 {offsets = [0, 256], sizes = [16, 256], strides = [1, 1]} : vector<16x512xf32> to vector<16x256xf32>
    %158 = arith.addf %156, %157 : vector<16x256xf32>
    %c0_96 = arith.constant 0 : index
    %c0_97 = arith.constant 0 : index
    %c256 = arith.constant 256 : index
    %159 = vector.load %arg11[%c0_96, %c0_97, %c256] : memref<1x16x512xf32, #tpu.memory_space<vmem>>, vector<1x16x256xf32>
    %160 = vector.shape_cast %159 : vector<1x16x256xf32> to vector<16x256xf32>
    %161 = vector.shape_cast %158 : vector<16x256xf32> to vector<1x16x256xf32>
    tpu.vector_store %arg11[%c0_96, %c0_97, %c256], %161 {strides = array<i32>} : memref<1x16x512xf32, #tpu.memory_space<vmem>>, vector<1x16x256xf32>,
    return
  }
  func.func @transform_0(%arg0: i32) -> (i32, i32, i32) {
    %c0_i32 = arith.constant 0 : i32
    %c0_i32_0 = arith.constant 0 : i32
    %c0_i32_1 = arith.constant 0 : i32
    return %arg0, %c0_i32, %c0_i32_0 : i32, i32, i32
  }
  func.func @transform_1(%arg0: i32) -> (i32, i32) {
    %c0_i32 = arith.constant 0 : i32
    %c0_i32_0 = arith.constant 0 : i32
    %c0_i32_1 = arith.constant 0 : i32
    return %c0_i32, %c0_i32_0 : i32, i32
  }
  func.func @transform_2(%arg0: i32) -> (i32, i32) {
    %c0_i32 = arith.constant 0 : i32
    %c0_i32_0 = arith.constant 0 : i32
    %c0_i32_1 = arith.constant 0 : i32
    return %c0_i32, %c0_i32_0 : i32, i32
  }
  func.func @transform_3(%arg0: i32) -> (i32, i32) {
    %c0_i32 = arith.constant 0 : i32
    %c0_i32_0 = arith.constant 0 : i32
    %c0_i32_1 = arith.constant 0 : i32
    return %c0_i32, %c0_i32_0 : i32, i32
  }
  func.func @transform_4(%arg0: i32) -> (i32, i32) {
    %c0_i32 = arith.constant 0 : i32
    %c0_i32_0 = arith.constant 0 : i32
    %c0_i32_1 = arith.constant 0 : i32
    return %c0_i32, %c0_i32_0 : i32, i32
  }
  func.func @transform_5(%arg0: i32) -> (i32, i32) {
    %c0_i32 = arith.constant 0 : i32
    %c0_i32_0 = arith.constant 0 : i32
    %c0_i32_1 = arith.constant 0 : i32
    return %c0_i32, %c0_i32_0 : i32, i32
  }
  func.func @transform_6(%arg0: i32) -> (i32, i32) {
    %c0_i32 = arith.constant 0 : i32
    %c0_i32_0 = arith.constant 0 : i32
    %c0_i32_1 = arith.constant 0 : i32
    return %c0_i32, %c0_i32_0 : i32, i32
  }
  func.func @transform_7(%arg0: i32) -> (i32, i32) {
    %c0_i32 = arith.constant 0 : i32
    %c0_i32_0 = arith.constant 0 : i32
    %c0_i32_1 = arith.constant 0 : i32
    return %c0_i32, %c0_i32_0 : i32, i32
  }
  func.func @transform_8(%arg0: i32) -> (i32, i32) {
    %c0_i32 = arith.constant 0 : i32
    %c0_i32_0 = arith.constant 0 : i32
    %c0_i32_1 = arith.constant 0 : i32
    return %c0_i32, %c0_i32_0 : i32, i32
  }
  func.func @transform_9(%arg0: i32) -> (i32, i32) {
    %c0_i32 = arith.constant 0 : i32
    %c0_i32_0 = arith.constant 0 : i32
    %c0_i32_1 = arith.constant 0 : i32
    return %c0_i32, %c0_i32_0 : i32, i32
  }
  func.func @transform_10(%arg0: i32) -> (i32, i32, i32) {
    %c0_i32 = arith.constant 0 : i32
    %c0_i32_0 = arith.constant 0 : i32
    %c0_i32_1 = arith.constant 0 : i32
    return %arg0, %c0_i32, %c0_i32_0 : i32, i32, i32
  }
}

</mosaic_0001>

<bundles_post_ra>
// kernel: rcab_forward.1
= control target key start
LH: loop header
LB: loop body
LE: loop exit
PB: predicated region body
PF: predicated region fallthrough
CT: control target
= control target key end

     0   :  { %s2216_s19 = smov 112   ;;  %s2217_s26 = smov 113   ;;  %v60_v10 = vlaneseq  ;;  %vm708_vm6 = vcmask 130048   ;;  %vm1610_vm9 = vcmask 7168   ;;  %vm1665_vm10 = vcmask 1043456   ;;  %s3541_s0 = inlined_call_operand.vmem [shape: f32[1,16,512], index: 0, kind: input, shape index: {}]   ;;  %s3542_s1 = inlined_call_operand.vmem [shape: f32[9,512], index: 1, kind: input, shape index: {}]   ;;  %s3543_s2 = inlined_call_operand.vmem [shape: bf16[16,144], index: 2, kind: input, shape index: {}]   ;;  %s3544_s3 = inlined_call_operand.vmem [shape: f32[16,1], index: 3, kind: input, shape index: {}]   ;;  %s3545_s5 = inlined_call_operand.vmem [shape: f32[16,1], index: 5, kind: input, shape index: {}]   ;;  %s3546_s4 = inlined_call_operand.vmem [shape: bf16[16,144], index: 4, kind: input, shape index: {}]   ;;  %s3547_s9 = inlined_call_operand.vmem [shape: f32[16,1], index: 9, kind: input, shape index: {}]   ;;  %s3548_s7 = inlined_call_operand.vmem [shape: f32[4,1], index: 7, kind: input, shape index: {}]   ;;  %s3549_s6 = inlined_call_operand.vmem [shape: f32[4,16], index: 6, kind: input, shape index: {}]   ;;  %s3550_s8 = inlined_call_operand.vmem [shape: f32[16,4], index: 8, kind: input, shape index: {}]   ;;  %s3551_s10 = inlined_call_operand.vmem [shape: f32[1,16,512], index: 10, kind: output, shape index: {}]  }
   0x1   :  { %v2284_v0 = vld [vmem:[%s3541_s0 + $0x10] sm:$0xff]  ;;  %v2289_v1 = vld [vmem:[%s3541_s0 + $0x8] sm:$0xff]  ;;  %v2294_v2 = vld [vmem:[%s3541_s0] sm:$0xff]  ;;  %s2218_s11 = smov 127   ;;  %s2219_s12 = smov 111   ;;  %vm1658_vm11 = vcmask 31744  }
   0x2   :  { %373 = vrot.lane.b32.xlu2 %v2284_v0, %s2216_s19  ;;  %369 = vrot.lane.b32.xlu1 %v2289_v1, %s2216_s19  ;;  %v2305_v3 = vld [vmem:[%s3541_s0 + $0x30] sm:$0xff]  ;;  %v2310_v4 = vld [vmem:[%s3541_s0 + $0x28] sm:$0xff]  ;;  %s2220_s13 = smov 1   ;;  %s2221_s14 = smov 15   ;;  %v2409_v12 = vand.u32 127, %v60_v10 }
   0x3   :  { %365 = vrot.lane.b32.xlu0 %v2294_v2, %s2216_s19  ;;  %v2315_v5 = vld [vmem:[%s3541_s0 + $0x20] sm:$0xff]  ;;  %v2338_v6 = vld [vmem:[%s3541_s0 + $0x38] sm:$0xff]  ;;  %s2222_s17 = smov 16   ;;  %s2223_s21 = smov 17  }
   0x4   :  { %v2343_v7 = vld [vmem:[%s3541_s0 + $0x18] sm:$0xff]  ;;  %vm381_vm0 = vcmp.lt.s32.totalorder %v2409_v12, 112  ;;  %vm329_vm1 = vcmp.lt.s32.totalorder %v2409_v12, 113  ;;  %vm277_vm2 = vcmp.lt.s32.totalorder %v2409_v12, 127  ;;  %vm433_vm3 = vcmp.lt.s32.totalorder %v2409_v12, 111 }
   0x5   :  { %v2414_v13 = vld [vmem:[%s3542_s1 + $0x7] ss:$8 sm:$0xf]  ;;  %v2461_v35 = vld [vmem:[%s3542_s1 + $0x6] ss:$8 sm:$0xf] }
   0x6   :  { %v394_v14 = vperm.slane %v2414_v13, 1  ;;  %v393_v15 = vperm.slane %v2414_v13, 0  ;;  %v341_v36 = vperm.slane %v2461_v35, 0  ;;  %v342_v37 = vperm.slane %v2461_v35, 1 }
   0x7   :  { %v343_v39 = vperm.slane %v2461_v35, 2  ;;  %v344_v40 = vperm.slane %v2461_v35, 3  ;;  %v395_v61 = vperm.slane %v2414_v13, 2  ;;  %v396_v62 = vperm.slane %v2414_v13, 3 }
   0x8   :  { %vm217_vm4 = vcmp.lt.s32.totalorder %v2409_v12, 1  ;;  %vm165_vm5 = vcmp.lt.s32.totalorder %v2409_v12, 15  ;;  %vm113_vm7 = vcmp.lt.s32.totalorder %v2409_v12, 16  ;;  %vm62_vm8 = vcmp.lt.s32.totalorder %v2409_v12, 17 }
   0xa   :  { %375 = vrot.lane.b32.xlu2 %v2305_v3, %s2216_s19  ;;  %371 = vrot.lane.b32.xlu1 %v2310_v4, %s2216_s19 }
   0xb   :  { %367 = vrot.lane.b32.xlu0 %v2315_v5, %s2216_s19 }
  0x12   :  { %317 = vrot.lane.b32.xlu2 %v2289_v1, %s2217_s26  ;;  %315 = vrot.lane.b32.xlu1 %v2315_v5, %s2217_s26 }
  0x13   :  { %313 = vrot.lane.b32.xlu0 %v2294_v2, %s2217_s26 }
  0x1a   :  { %323 = vrot.lane.b32.xlu2 %v2305_v3, %s2217_s26  ;;  %321 = vrot.lane.b32.xlu1 %v2284_v0, %s2217_s26 }
  0x1b   :  { %319 = vrot.lane.b32.xlu0 %v2310_v4, %s2217_s26 }
  0x22   :  { %379 = vrot.lane.b32.xlu1 %v2338_v6, %s2216_s19  ;;  %261 = vrot.lane.b32.xlu2 %v2294_v2, %s2218_s11 }
  0x23   :  { %377 = vrot.lane.b32.xlu0 %v2343_v7, %s2216_s19 }
  0x2a   :  { %265 = vrot.lane.b32.xlu1 %v2289_v1, %s2218_s11  ;;  %267 = vrot.lane.b32.xlu2 %v2310_v4, %s2218_s11 }
  0x2b   :  { %263 = vrot.lane.b32.xlu0 %v2315_v5, %s2218_s11 }
  0x32   :  { %271 = vrot.lane.b32.xlu1 %v2305_v3, %s2218_s11  ;;  %325 = vrot.lane.b32.xlu2 %v2343_v7, %s2217_s26 }
  0x33   :  { %269 = vrot.lane.b32.xlu0 %v2284_v0, %s2218_s11 }
  0x3a   :  { %417 = vrot.lane.b32.xlu1 %v2294_v2, %s2219_s12  ;;  %419 = vrot.lane.b32.xlu2 %v2315_v5, %s2219_s12 }
  0x3b   :  { %327 = vrot.lane.b32.xlu0 %v2338_v6, %s2217_s26 }
  0x42   :  { %423 = vrot.lane.b32.xlu1 %v2310_v4, %s2219_s12  ;;  %425 = vrot.lane.b32.xlu2 %v2284_v0, %s2219_s12 }
  0x43   :  { %421 = vrot.lane.b32.xlu0 %v2289_v1, %s2219_s12 }
  0x4a   :  { %273 = vrot.lane.b32.xlu1 %v2343_v7, %s2218_s11  ;;  %275 = vrot.lane.b32.xlu2 %v2338_v6, %s2218_s11 }
  0x4b   :  { %427 = vrot.lane.b32.xlu0 %v2305_v3, %s2219_s12 }
  0x52   :  { %203 = vrot.lane.b32.xlu1 %v2315_v5, %s2220_s13  ;;  %205 = vrot.lane.b32.xlu2 %v2289_v1, %s2220_s13 }
  0x53   :  { %201 = vrot.lane.b32.xlu0 %v2294_v2, %s2220_s13 }
  0x5a   :  { %213 = vrot.lane.b32.xlu1 %v2343_v7, %s2220_s13  ;;  %215 = vrot.lane.b32.xlu2 %v2338_v6, %s2220_s13 }
  0x5b   :  { %207 = vrot.lane.b32.xlu0 %v2310_v4, %s2220_s13 }
  0x5c   :  { %v2393_v8 = vpop.permute.xlu2 %373 }
  0x62   :  { %151 = vrot.lane.b32.xlu1 %v2315_v5, %s2221_s14  ;;  %153 = vrot.lane.b32.xlu2 %v2289_v1, %s2221_s14 }
  0x63   :  { %149 = vrot.lane.b32.xlu0 %v2294_v2, %s2221_s14 }
  0x64   :  { %v2401_v9 = vpop.permute.xlu2 %375 }
  0x6a   :  { %161 = vrot.lane.b32.xlu1 %v2343_v7, %s2221_s14  ;;  %163 = vrot.lane.b32.xlu2 %v2338_v6, %s2221_s14 }
  0x6b   :  { %155 = vrot.lane.b32.xlu0 %v2310_v4, %s2221_s14 }
  0x6c   :  { %v318_v11 = vpop.permute.xlu2 %317 }
  0x72   :  { %211 = vrot.lane.b32.xlu1 %v2305_v3, %s2220_s13  ;;  %97 = vrot.lane.b32.xlu2 %v2294_v2, %s2222_s17 }
  0x73   :  { %209 = vrot.lane.b32.xlu0 %v2284_v0, %s2220_s13 }
  0x74   :  { %v2425_v16 = vpop.permute.xlu2 %323  ;;  %v370_v17 = vpop.permute.xlu1 %369 }
  0x75   :  { %v384_v18 = vsel %vm381_vm0, %v370_v17, %v2393_v8  ;;  %v2430_v19 = vpop.permute.xlu0 %365 }
  0x76   :  { %v402_v20 = vmul.f32 %v394_v14, %v384_v18  ;;  %v386_v21 = vsel %vm381_vm0, %v2430_v19, %v370_v17 }
  0x77   :  { %v401_v22 = vmul.f32 %v393_v15, %v386_v21 }
  0x79   :  { %v409_v23 = vpack.c.bf16 %v402_v20, %v401_v22 }
  0x7a   :  { %101 = vrot.lane.b32.xlu1 %v2289_v1, %s2222_s17  ;;  %103 = vrot.lane.b32.xlu2 %v2310_v4, %s2222_s17 }
  0x7b   :  { %413 = vst [vmem:[#allocation2 + $0xe0] sm:$0xff] %v409_v23  ;;  %99 = vrot.lane.b32.xlu0 %v2315_v5, %s2222_s17 }
  0x7c   :  { %v372_v24 = vpop.permute.xlu1 %371  ;;  %v2441_v25 = vpop.permute.xlu2 %261 }
  0x7d   :  { %v385_v26 = vsel %vm381_vm0, %v372_v24, %v2401_v9  ;;  %v368_v27 = vpop.permute.xlu0 %367 }
  0x7e   :  { %v406_v28 = vmul.f32 %v394_v14, %v385_v26  ;;  %v387_v29 = vsel %vm381_vm0, %v368_v27, %v372_v24 }
  0x7f   :  { %v405_v30 = vmul.f32 %v393_v15, %v387_v29  ;;  %v2524_v29 = vld [vmem:[%s3542_s1 + $0x5] ss:$8 sm:$0xf] }
  0x81   :  { %v411_v31 = vpack.c.bf16 %v406_v28, %v405_v30  ;;  %v289_v30 = vperm.slane %v2524_v29, 0 }
  0x82   :  { %111 = vrot.lane.b32.xlu1 %v2338_v6, %s2222_s17  ;;  %157 = vrot.lane.b32.xlu2 %v2284_v0, %s2221_s14  ;;  %v1905_v41 = vld [vmem:[#allocation2 + $0xe0] sm:$0xf] }
  0x83   :  { %415 = vst [vmem:[#allocation2 + $0xf0] sm:$0xff] %v411_v31  ;;  %109 = vrot.lane.b32.xlu0 %v2343_v7, %s2222_s17 }
  0x84   :  { %v2454_v32 = vpop.permute.xlu1 %315  ;;  %v2456_v33 = vpop.permute.xlu2 %267 }
  0x85   :  { %v314_v34 = vpop.permute.xlu0 %313 }
  0x86   :  { %v334_v38 = vsel %vm329_vm1, %v314_v34, %v318_v11 }
  0x87   :  { %v349_v46 = vmul.f32 %v341_v36, %v334_v38  ;;  %v292_v38 = vperm.slane %v2524_v29, 3 }
  0x8a   :  { %429 = vrot.lane.b32.xlu1 %v2343_v7, %s2219_s12  ;;  %431 = vrot.lane.b32.xlu2 %v2338_v6, %s2219_s12  ;;  %v2140_v42 = vld [vmem:[#allocation2 + $0xec] sm:$0xf0] }
  0x8b   :  { %159 = vrot.lane.b32.xlu0 %v2305_v3, %s2221_s14  ;;  %v1906_v43 = vor.u32 %v2140_v42, %v1905_v41 }
  0x8c   :  { %v322_v44 = vpop.permute.xlu1 %321  ;;  %v326_v45 = vpop.permute.xlu2 %325 }
  0x8d   :  { %v332_v47 = vsel %vm329_vm1, %v318_v11, %v322_v44  ;;  %v330_v48 = vsel %vm329_vm1, %v322_v44, %v326_v45  ;;  %v336_v49 = vsel %vm329_vm1, %v326_v45, %v314_v34  ;;  %712 = vmatpush.bf16.msra.mxu0 %v1906_v43  ;;  %v320_v50 = vpop.permute.xlu0 %319 }
  0x8e   :  { %v350_v51 = vmul.f32 %v342_v37, %v332_v47  ;;  %v351_v52 = vmul.f32 %v343_v39, %v330_v48  ;;  %v352_v53 = vmul.f32 %v344_v40, %v336_v49  ;;  %v333_v54 = vsel %vm329_vm1, %v320_v50, %v2425_v16 }
  0x8f   :  { %v335_v55 = vsel %vm329_vm1, %v2454_v32, %v320_v50  ;;  %v354_v56 = vmul.f32 %v342_v37, %v333_v54  ;;  %v291_v37 = vperm.slane %v2524_v29, 2 }
  0x90   :  { %v357_v57 = vpack.c.bf16 %v350_v51, %v349_v46  ;;  %v358_v58 = vpack.c.bf16 %v352_v53, %v351_v52  ;;  %v353_v59 = vmul.f32 %v341_v36, %v335_v55  ;;  %v290_v36 = vperm.slane %v2524_v29, 1  ;;  %v1907_v29 = vld [vmem:[#allocation2 + $0xf0] sm:$0xf0] }
  0x92   :  { %361 = vst [vmem:[#allocation2 + $0xc0] sm:$0xff] %v357_v57  ;;  %v359_v60 = vpack.c.bf16 %v354_v56, %v353_v59  ;;  %46 = vrot.lane.b32.xlu1 %v2315_v5, %s2223_s21  ;;  %48 = vrot.lane.b32.xlu2 %v2289_v1, %s2223_s21 }
  0x93   :  { %362 = vst [vmem:[#allocation2 + $0xc8] sm:$0xff] %v358_v58  ;;  %44 = vrot.lane.b32.xlu0 %v2294_v2, %s2223_s21 }
  0x94   :  { %363 = vst [vmem:[#allocation2 + $0xd0] sm:$0xff] %v359_v60  ;;  %v380_v63 = vpop.permute.xlu1 %379  ;;  %v2500_v10 = vpop.permute.xlu2 %419 }
  0x95   :  { %v383_v11 = vsel %vm381_vm0, %v2401_v9, %v380_v63  ;;  %v389_v14 = vsel %vm381_vm0, %v380_v63, %v368_v27  ;;  %v378_v15 = vpop.permute.xlu0 %377 }
  0x96   :  { %v407_v13 = vmul.f32 %v395_v61, %v383_v11  ;;  %v408_v17 = vmul.f32 %v396_v62, %v389_v14  ;;  %v382_v18 = vsel %vm381_vm0, %v2393_v8, %v378_v15  ;;  %v388_v20 = vsel %vm381_vm0, %v378_v15, %v2430_v19 }
  0x97   :  { %v403_v21 = vmul.f32 %v395_v61, %v382_v18  ;;  %v404_v22 = vmul.f32 %v396_v62, %v388_v20  ;;  %v253_v11 = vpack.c.bf16 %v2289_v1, %v2294_v2  ;;  %v255_v14 = vpack.c.bf16 %v2310_v4, %v2315_v5 }
  0x98   :  { %v412_v23 = vpack.c.bf16 %v408_v17, %v407_v13 }
  0x99   :  { %v410_v24 = vpack.c.bf16 %v404_v22, %v403_v21  ;;  %v1889_v26 = vld [vmem:[#allocation2 + $0xc0] sm:$0xf]  ;;  %257 = vst [vmem:[#allocation2 + $0x80] sm:$0xff] %v253_v11 }
  0x9a   :  { %416 = vst [vmem:[#allocation2 + $0xf8] sm:$0xff] %v412_v23  ;;  %56 = vrot.lane.b32.xlu1 %v2343_v7, %s2223_s21  ;;  %58 = vrot.lane.b32.xlu2 %v2338_v6, %s2223_s21 }
  0x9b   :  { %414 = vst [vmem:[#allocation2 + $0xe8] sm:$0xff] %v410_v24  ;;  %50 = vrot.lane.b32.xlu0 %v2310_v4, %s2223_s21  ;;  %v2136_v8 = vld [vmem:[#allocation2 + $0xcc] sm:$0xf0] }
  0x9c   :  { %v266_v9 = vpop.permute.xlu1 %265  ;;  %v2519_v27 = vpop.permute.xlu2 %425  ;;  %v1890_v19 = vor.u32 %v2136_v8, %v1889_v26  ;;  %259 = vst [vmem:[#allocation2 + $0x90] sm:$0xff] %v255_v14 }
  0x9d   :  { %v264_v28 = vpop.permute.xlu0 %263  ;;  %v282_v43 = vsel %vm277_vm2, %v2441_v25, %v266_v9 }
  0x9e   :  { %713 = vmatpush.bf16.msra.mxu0 %v1890_v19  ;;  %v283_v34 = vsel %vm277_vm2, %v264_v28, %v2456_v33  ;;  %v297_v55 = vmul.f32 %v289_v30, %v282_v43 }
  0x9f   :  { %v301_v46 = vmul.f32 %v289_v30, %v283_v34 }
  0xa0   :  { %v1857_v23 = vld [vmem:[#allocation2 + $0x80] sm:$0xf] }
  0xa1   :  { %v2141_v31 = vld [vmem:[#allocation2 + $0xf4] sm:$0xf0] }
  0xa2   :  { %107 = vrot.lane.b32.xlu1 %v2305_v3, %s2222_s17  ;;  %v1913_v41 = vld [vmem:[#allocation2 + $0xe8] sm:$0xf]  ;;  %52 = vrot.lane.b32.xlu2 %v2284_v0, %s2223_s21 }
  0xa3   :  { %105 = vrot.lane.b32.xlu0 %v2284_v0, %s2222_s17  ;;  %v1914_v42 = vor.u32 %v2141_v31, %v1913_v41  ;;  %v2128_v24 = vld [vmem:[#allocation2 + $0x8c] sm:$0xf0] }
  0xa4   :  { %v272_v44 = vpop.permute.xlu1 %271  ;;  %v276_v45 = vpop.permute.xlu2 %275  ;;  %v1858_v8 = vor.u32 %v2128_v24, %v1857_v23 }
  0xa5   :  { %v281_v47 = vsel %vm277_vm2, %v2456_v33, %v272_v44  ;;  %v279_v48 = vsel %vm277_vm2, %v272_v44, %v276_v45  ;;  %v285_v49 = vsel %vm277_vm2, %v276_v45, %v264_v28  ;;  %768 = vmatpush.bf16.msra.mxu1 %v1914_v42  ;;  %v270_v50 = vpop.permute.xlu0 %269 }
  0xa6   :  { %v302_v51 = vmul.f32 %v290_v36, %v281_v47  ;;  %v303_v52 = vmul.f32 %v291_v37, %v279_v48  ;;  %v304_v53 = vmul.f32 %v292_v38, %v285_v49  ;;  %v280_v54 = vsel %vm277_vm2, %v266_v9, %v270_v50  ;;  %v1897_v9 = vld [vmem:[#allocation2 + $0xc8] sm:$0xf] }
  0xa7   :  { %v298_v33 = vmul.f32 %v290_v36, %v280_v54 }
  0xa8   :  { %v307_v56 = vpack.c.bf16 %v302_v51, %v301_v46  ;;  %v308_v57 = vpack.c.bf16 %v304_v53, %v303_v52  ;;  %v256_v52 = vpack.c.bf16 %v2338_v6, %v2305_v3 }
  0xa9   :  { %v305_v58 = vpack.c.bf16 %v298_v33, %v297_v55 }
  0xaa   :  { %311 = vst [vmem:[#allocation2 + $0xb0] sm:$0xff] %v307_v56 }
  0xab   :  { %312 = vst [vmem:[#allocation2 + $0xb8] sm:$0xff] %v308_v57  ;;  %54 = vrot.lane.b32.xlu0 %v2305_v3, %s2223_s21 }
  0xac   :  { %309 = vst [vmem:[#allocation2 + $0xa0] sm:$0xff] %v305_v58  ;;  %v2558_v59 = vpop.permute.xlu1 %417  ;;  %v2560_v60 = vpop.permute.xlu2 %205 }
  0xad   :  { %v328_v61 = vpop.permute.xlu0 %327  ;;  %260 = vst [vmem:[#allocation2 + $0x98] sm:$0xff] %v256_v52 }
  0xae   :  { %v331_v62 = vsel %vm329_vm1, %v2425_v16, %v328_v61  ;;  %v337_v63 = vsel %vm329_vm1, %v328_v61, %v2454_v32  ;;  %v2579_v16 = vld [vmem:[%s3542_s1 + $0x20] ss:$8 sm:$0xf] }
  0xaf   :  { %v355_v15 = vmul.f32 %v343_v39, %v331_v62  ;;  %v356_v13 = vmul.f32 %v344_v40, %v337_v63  ;;  %v445_v1 = vperm.slane %v2579_v16, 0  ;;  %v446_v4 = vperm.slane %v2579_v16, 1 }
  0xb1   :  { %v360_v17 = vpack.c.bf16 %v356_v13, %v355_v15  ;;  %v2132_v32 = vld [vmem:[#allocation2 + $0xac] sm:$0xf0]  ;;  %v1875_v24 = vld [vmem:[#allocation2 + $0xb0] sm:$0xf0] }
  0xb2   :  { %v2133_v54 = vld [vmem:[#allocation2 + $0xb4] sm:$0xf0] }
  0xb3   :  { %364 = vst [vmem:[#allocation2 + $0xd8] sm:$0xff] %v360_v17  ;;  %v1873_v2 = vld [vmem:[#allocation2 + $0xa0] sm:$0xf]  ;;  %v2130_v23 = vld [vmem:[#allocation2 + $0xa4] sm:$0xf] }
  0xb4   :  { %v424_v5 = vpop.permute.xlu1 %423  ;;  %v2584_v35 = vpop.permute.xlu2 %215  ;;  %v1874_v39 = vor.u32 %v2132_v32, %v1873_v2  ;;  %v2134_v32 = vld [vmem:[#allocation2 + $0xc4] sm:$0xf] }
  0xb5   :  { %v422_v40 = vpop.permute.xlu0 %421  ;;  %v439_v30 = vsel %vm433_vm3, %v2500_v10, %v424_v5 }
  0xb6   :  { %714 = vmatpush.bf16.msra.mxu0 %v1874_v39  ;;  %v436_v18 = vsel %vm433_vm3, %v422_v40, %v2519_v27  ;;  %v438_v20 = vsel %vm433_vm3, %v2558_v59, %v422_v40  ;;  %v457_v46 = vmul.f32 %v445_v1, %v439_v30 }
  0xb7   :  { %v453_v21 = vmul.f32 %v445_v1, %v438_v20  ;;  %v454_v22 = vmul.f32 %v446_v4, %v436_v18  ;;  %v1891_v1 = vld [vmem:[#allocation2 + $0xd0] sm:$0xf0] }
  0xb8   :  { %v1894_v20 = vor.u32 %v2134_v32, %v1891_v1 }
  0xb9   :  { %v461_v26 = vpack.c.bf16 %v454_v22, %v453_v21 }
  0xba   :  { %v2137_v19 = vld [vmem:[#allocation2 + $0xd4] sm:$0xf0]  ;;  %715 = vmatpush.bf16.msra.mxu0 %v1858_v8 }
  0xbb   :  { %465 = vst [vmem:[#allocation2 + $0x100] sm:$0xff] %v461_v26  ;;  %v1898_v28 = vor.u32 %v2137_v19, %v1897_v9  ;;  %v2129_v26 = vld [vmem:[#allocation2 + $0x94] sm:$0xf0]  ;;  %v2126_v9 = vld [vmem:[#allocation2 + $0x84] sm:$0xf] }
  0xbc   :  { %v274_v31 = vpop.permute.xlu1 %273  ;;  %v2595_v34 = vpop.permute.xlu2 %153  ;;  %v1859_v19 = vld [vmem:[#allocation2 + $0x90] sm:$0xf0] }
  0xbd   :  { %v278_v36 = vsel %vm277_vm2, %v270_v50, %v274_v31  ;;  %v284_v41 = vsel %vm277_vm2, %v274_v31, %v2441_v25  ;;  %769 = vmatpush.bf16.msra.mxu1 %v1898_v28  ;;  %v2602_v42 = vpop.permute.xlu0 %427  ;;  %v1878_v31 = vor.u32 %v2130_v23, %v1875_v24 }
  0xbe   :  { %v299_v43 = vmul.f32 %v291_v37, %v278_v36  ;;  %v300_v44 = vmul.f32 %v292_v38, %v284_v41  ;;  %v437_v45 = vsel %vm433_vm3, %v424_v5, %v2602_v42  ;;  %v2616_v37 = vld [vmem:[%s3542_s1 + $0x3] ss:$8 sm:$0xf]  ;;  %v254_v38 = vpack.c.bf16 %v2343_v7, %v2284_v0  ;;  %v2138_v7 = vld [vmem:[#allocation2 + $0xe4] sm:$0xf] }
  0xbf   :  { %v458_v47 = vmul.f32 %v446_v4, %v437_v45  ;;  %v230_v56 = vperm.slane %v2616_v37, 1  ;;  %v229_v62 = vperm.slane %v2616_v37, 0  ;;  %v1910_v15 = vor.u32 %v2138_v7, %v1907_v29  ;;  %v2648_v41 = vld [vmem:[%s3542_s1 + $0x2] ss:$8 sm:$0xf] }
  0xc0   :  { %v306_v48 = vpack.c.bf16 %v300_v44, %v299_v43  ;;  %258 = vst [vmem:[#allocation2 + $0x88] sm:$0xff] %v254_v38  ;;  %v1862_v43 = vor.u32 %v2126_v9, %v1859_v19  ;;  %v178_v44 = vperm.slane %v2648_v41, 1  ;;  %v177_v29 = vperm.slane %v2648_v41, 0 }
  0xc1   :  { %v463_v49 = vpack.c.bf16 %v458_v47, %v457_v46  ;;  %v231_v32 = vperm.slane %v2616_v37, 2  ;;  %v232_v1 = vperm.slane %v2616_v37, 3 }
  0xc2   :  { %310 = vst [vmem:[#allocation2 + $0xa8] sm:$0xff] %v306_v48  ;;  %v1921_v53 = vld [vmem:[#allocation2 + $0x100] sm:$0xf]  ;;  %v2142_v55 = vld [vmem:[#allocation2 + $0x104] sm:$0xf]  ;;  %v179_v48 = vperm.slane %v2648_v41, 2 }
  0xc3   :  { %467 = vst [vmem:[#allocation2 + $0x110] sm:$0xff] %v463_v49  ;;  %v180_v49 = vperm.slane %v2648_v41, 3  ;;  %v507_v41 = vld [vmem:[%s3544_s3] sm:$0xff] }
  0xc4   :  { %v204_v25 = vpop.permute.xlu1 %203  ;;  %v2611_v50 = vpop.permute.xlu2 %163 }
  0xc5   :  { %v202_v51 = vpop.permute.xlu0 %201  ;;  %v225_v63 = vsel %vm217_vm4, %v2584_v35, %v204_v25 }
  0xc6   :  { %v222_v0 = vsel %vm217_vm4, %v202_v51, %v2560_v60  ;;  %v241_v39 = vmul.f32 %v229_v62, %v225_v63 }
  0xc7   :  { %v238_v2 = vmul.f32 %v230_v56, %v222_v0  ;;  %v1865_v21 = vld [vmem:[#allocation2 + $0x88] sm:$0xf] }
  0xc8   :  { %v1866_v8 = vor.u32 %v2129_v26, %v1865_v21 }
  0xc9   :  { %v1881_v33 = vld [vmem:[#allocation2 + $0xa8] sm:$0xf] }
  0xca   :  { %v2144_v57 = vld [vmem:[#allocation2 + $0x10c] sm:$0xf0]  ;;  %v1923_v58 = vld [vmem:[#allocation2 + $0x110] sm:$0xf0]  ;;  %v1882_v61 = vor.u32 %v2133_v54, %v1881_v33 }
  0xcb   :  { %v1922_v3 = vor.u32 %v2144_v57, %v1921_v53  ;;  %v1926_v6 = vor.u32 %v2142_v55, %v1923_v58 }
  0xcc   :  { %v2631_v11 = vpop.permute.xlu1 %213  ;;  %v2633_v14 = vpop.permute.xlu2 %97  ;;  %770 = vmatpush.bf16.msra.mxu1 %v1882_v61 }
  0xcd   :  { %v224_v13 = vsel %vm217_vm4, %v2631_v11, %v202_v51  ;;  %733 = vmatpush.bf16.msra.mxu2 %v1922_v3  ;;  %761 = vmatpush.bf16.msra.mxu3 %v1926_v6  ;;  %v2638_v17 = vpop.permute.xlu0 %207 }
  0xce   :  { %v237_v4 = vmul.f32 %v229_v62, %v224_v13  ;;  %v223_v5 = vsel %vm217_vm4, %v204_v25, %v2638_v17 }
  0xcf   :  { %v242_v40 = vmul.f32 %v230_v56, %v223_v5 }
  0xd0   :  { %v245_v18 = vpack.c.bf16 %v238_v2, %v237_v4  ;;  %771 = vmatpush.bf16.msra.mxu1 %v1866_v8  ;;  %v447_v2 = vperm.slane %v2579_v16, 2  ;;  %v448_v4 = vperm.slane %v2579_v16, 3 }
  0xd1   :  { %740 = vmatpush.bf16.msrb.mxu2 %v1910_v15  ;;  %v247_v22 = vpack.c.bf16 %v242_v40, %v241_v39 }
  0xd2   :  { %249 = vst [vmem:[#allocation2 + $0x60] sm:$0xff] %v245_v18 }
  0xd3   :  { %251 = vst [vmem:[#allocation2 + $0x70] sm:$0xff] %v247_v22 }
  0xd4   :  { %v152_v28 = vpop.permute.xlu1 %151  ;;  %v2643_v30 = vpop.permute.xlu2 %103 }
  0xd5   :  { %741 = vmatpush.bf16.msrb.mxu2 %v1894_v20  ;;  %v150_v36 = vpop.permute.xlu0 %149  ;;  %v173_v53 = vsel %vm165_vm5, %v2611_v50, %v152_v28 }
  0xd6   :  { %v170_v47 = vsel %vm165_vm5, %v150_v36, %v2595_v34  ;;  %v189_v7 = vmul.f32 %v177_v29, %v173_v53 }
  0xd7   :  { %v186_v33 = vmul.f32 %v178_v44, %v170_v47 }
  0xd9   :  { %742 = vmatpush.bf16.msrb.mxu2 %v1878_v31  ;;  %v1841_v45 = vld [vmem:[#allocation2 + $0x60] sm:$0xf]  ;;  %v2122_v46 = vld [vmem:[#allocation2 + $0x64] sm:$0xf] }
  0xda   :  { %v2124_v25 = vld [vmem:[#allocation2 + $0x6c] sm:$0xf0]  ;;  %v1843_v51 = vld [vmem:[#allocation2 + $0x70] sm:$0xf0] }
  0xdb   :  { %v1842_v38 = vor.u32 %v2124_v25, %v1841_v45  ;;  %v1846_v52 = vor.u32 %v2122_v46, %v1843_v51  ;;  %v1787_v46 = vld [vmem:[%s3543_s2 + $0x8] sm:$0xf0]  ;;  %v2716_v51 = vld [vmem:[%s3542_s1 + $0x1] ss:$8 sm:$0xf] }
  0xdc   :  { %v162_v54 = vpop.permute.xlu1 %161  ;;  %v158_v55 = vpop.permute.xlu2 %157 }
  0xdd   :  { %743 = vmatpush.bf16.msrb.mxu2 %v1862_v43  ;;  %v172_v56 = vsel %vm165_vm5, %v162_v54, %v150_v36  ;;  %v166_v57 = vsel %vm165_vm5, %v158_v55, %v162_v54  ;;  %v168_v58 = vsel %vm165_vm5, %v2595_v34, %v158_v55  ;;  %v2668_v61 = vpop.permute.xlu0 %155  ;;  %716 = vmatpush.bf16.msra.mxu0 %v1842_v38  ;;  %v126_v38 = vperm.slane %v2716_v51, 1 }
  0xde   :  { %v185_v62 = vmul.f32 %v177_v29, %v172_v56  ;;  %v187_v0 = vmul.f32 %v179_v48, %v168_v58  ;;  %v188_v3 = vmul.f32 %v180_v49, %v166_v57  ;;  %v171_v6 = vsel %vm165_vm5, %v152_v28, %v2668_v61 }
  0xdf   :  { %v190_v63 = vmul.f32 %v178_v44, %v171_v6 }
  0xe0   :  { %v193_v15 = vpack.c.bf16 %v186_v33, %v185_v62  ;;  %v194_v13 = vpack.c.bf16 %v188_v3, %v187_v0 }
  0xe1   :  { %744 = vmatpush.bf16.msrb.mxu2 %v1846_v52  ;;  %v195_v34 = vpack.c.bf16 %v190_v63, %v189_v7  ;;  %v125_v52 = vperm.slane %v2716_v51, 0 }
  0xe2   :  { %197 = vst [vmem:[#allocation2 + $0x40] sm:$0xff] %v193_v15 }
  0xe3   :  { %198 = vst [vmem:[#allocation2 + $0x48] sm:$0xff] %v194_v13 }
  0xe4   :  { %199 = vst [vmem:[#allocation2 + $0x50] sm:$0xff] %v195_v34  ;;  %v212_v5 = vpop.permute.xlu1 %211  ;;  %v432_v39 = vpop.permute.xlu2 %431 }
  0xe5   :  { %v219_v40 = vsel %vm217_vm4, %v212_v5, %v2584_v35  ;;  %v221_v18 = vsel %vm217_vm4, %v2638_v17, %v212_v5  ;;  %v435_v37 = vsel %vm433_vm3, %v2602_v42, %v432_v39  ;;  %v441_v20 = vsel %vm433_vm3, %v432_v39, %v2500_v10  ;;  %v210_v21 = vpop.permute.xlu0 %209 }
  0xe6   :  { %v243_v22 = vmul.f32 %v231_v32, %v221_v18  ;;  %v244_v23 = vmul.f32 %v232_v1, %v219_v40  ;;  %v459_v24 = vmul.f32 %v447_v2, %v435_v37  ;;  %v460_v35 = vmul.f32 %v448_v4, %v441_v20 }
  0xe7   :  { %v218_v17 = vsel %vm217_vm4, %v210_v21, %v2631_v11  ;;  %v220_v42 = vsel %vm217_vm4, %v2560_v60, %v210_v21  ;;  %v2108_v60 = vld [vmem:[%s3543_s2 + $0x4] sm:$0xf] }
  0xe8   :  { %v248_v26 = vpack.c.bf16 %v244_v23, %v243_v22  ;;  %v464_v8 = vpack.c.bf16 %v460_v35, %v459_v24  ;;  %v239_v10 = vmul.f32 %v231_v32, %v220_v42  ;;  %v240_v9 = vmul.f32 %v232_v1, %v218_v17  ;;  %v2139_v42 = vld [vmem:[#allocation2 + $0xec] sm:$0xf] }
  0xe9   :  { %v1825_v19 = vld [vmem:[#allocation2 + $0x40] sm:$0xf]  ;;  %v2118_v28 = vld [vmem:[#allocation2 + $0x44] sm:$0xf]  ;;  %v2711_v25 = vor.u32 %v2108_v60, %v1787_v46 }
  0xea   :  { %252 = vst [vmem:[#allocation2 + $0x78] sm:$0xff] %v248_v26  ;;  %v246_v31 = vpack.c.bf16 %v240_v9, %v239_v10  ;;  %v1915_v26 = vld [vmem:[#allocation2 + $0xf8] sm:$0xf0] }
  0xeb   :  { %468 = vst [vmem:[#allocation2 + $0x118] sm:$0xff] %v464_v8  ;;  %v2120_v36 = vld [vmem:[#allocation2 + $0x4c] sm:$0xf0]  ;;  %v1827_v43 = vld [vmem:[#allocation2 + $0x50] sm:$0xf0]  ;;  %1936 = vmatmul.msk.bf16.vlgmr.msra.gmra.mxu3 %vm708_vm6, %v2711_v25  ;;  %1935 = vmatmul.msk.bf16.vlgmr.msra.gmra.mxu2 %vm708_vm6, %v2711_v25  ;;  %v1918_v46 = vor.u32 %v2139_v42, %v1915_v26 }
  0xec   :  { %250 = vst [vmem:[#allocation2 + $0x68] sm:$0xff] %v246_v31  ;;  %v2703_v44 = vpop.permute.xlu1 %101  ;;  %v1826_v45 = vor.u32 %v2120_v36, %v1825_v19  ;;  %v1830_v11 = vor.u32 %v2118_v28, %v1827_v43  ;;  %v2725_v53 = vpop.permute.xlu2 %48  ;;  %v1833_v31 = vld [vmem:[#allocation2 + $0x48] sm:$0xf]  ;;  %v1785_v42 = vld [vmem:[%s3543_s2] sm:$0xf] }
  0xed   :  { %v100_v47 = vpop.permute.xlu0 %99  ;;  %v118_v33 = vsel %vm113_vm7, %v2633_v14, %v2703_v44 }
  0xee   :  { %717 = vmatpush.bf16.msra.mxu0 %v1826_v45  ;;  %745 = vmatpush.bf16.msrb.mxu2 %v1830_v11  ;;  %v119_v54 = vsel %vm113_vm7, %v100_v47, %v2643_v30  ;;  %v134_v7 = vmul.f32 %v126_v38, %v118_v33 }
  0xef   :  { %v138_v0 = vmul.f32 %v126_v38, %v119_v54 }
  0xf1   :  { %v2125_v29 = vld [vmem:[#allocation2 + $0x74] sm:$0xf0] }
  0xf2   :  { %v2145_v9 = vld [vmem:[#allocation2 + $0x114] sm:$0xf0] }
  0xf3   :  { %v1849_v55 = vld [vmem:[#allocation2 + $0x68] sm:$0xf] }
  0xf4   :  { %v2734_v56 = vpop.permute.xlu1 %111  ;;  %v1850_v57 = vor.u32 %v2125_v29, %v1849_v55  ;;  %v2745_v32 = vpop.permute.xlu2 %58 }
  0xf5   :  { %v121_v58 = vsel %vm113_vm7, %v2734_v56, %v100_v47  ;;  %v2739_v62 = vpop.permute.xlu0 %109 }
  0xf6   :  { %v137_v3 = vmul.f32 %v125_v52, %v121_v58  ;;  %772 = vmatpush.bf16.msra.mxu1 %v1850_v57  ;;  %v120_v6 = vsel %vm113_vm7, %v2739_v62, %v2633_v14 }
  0xf7   :  { %v133_v63 = vmul.f32 %v125_v52, %v120_v6  ;;  %v1899_v52 = vld [vmem:[#allocation2 + $0xd8] sm:$0xf0] }
  0xf8   :  { %v143_v15 = vpack.c.bf16 %v138_v0, %v137_v3  ;;  %v2135_v3 = vld [vmem:[#allocation2 + $0xcc] sm:$0xf] }
  0xf9   :  { %v141_v13 = vpack.c.bf16 %v134_v7, %v133_v63  ;;  %v1902_v63 = vor.u32 %v2135_v3, %v1899_v52 }
  0xfa   :  { %147 = vst [vmem:[#allocation2 + $0x30] sm:$0xff] %v143_v15 }
  0xfb   :  { %145 = vst [vmem:[#allocation2 + $0x20] sm:$0xff] %v141_v13 }
  0xfc   :  { %v430_v34 = vpop.permute.xlu1 %429 }
  0xfd   :  { %v434_v1 = vsel %vm433_vm3, %v2519_v27, %v430_v34  ;;  %v440_v5 = vsel %vm433_vm3, %v430_v34, %v2558_v59  ;;  %v160_v39 = vpop.permute.xlu0 %159  ;;  %v2131_v34 = vld [vmem:[#allocation2 + $0xac] sm:$0xf] }
  0xfe   :  { %v455_v14 = vmul.f32 %v447_v2, %v434_v1  ;;  %v456_v40 = vmul.f32 %v448_v4, %v440_v5  ;;  %v167_v18 = vsel %vm165_vm5, %v160_v39, %v2611_v50  ;;  %v169_v37 = vsel %vm165_vm5, %v2668_v61, %v160_v39  ;;  %v53_v61 = vpop.permute.xlu2 %52  ;;  %v1883_v39 = vld [vmem:[#allocation2 + $0xb8] sm:$0xf0] }
  0xff   :  { %v191_v27 = vmul.f32 %v179_v48, %v169_v37  ;;  %v192_v59 = vmul.f32 %v180_v49, %v167_v18  ;;  %v2773_v48 = vld [vmem:[%s3542_s1] ss:$8 sm:$0xf]  ;;  %v2224_v49 = vmov 0   ;;  %v65_v8 = vsel %vm62_vm8, %v2725_v53, %v53_v61  ;;  %v2127_v18 = vld [vmem:[#allocation2 + $0x8c] sm:$0xf] }
 0x100   :  { %v462_v20 = vpack.c.bf16 %v456_v40, %v455_v14  ;;  %2194 = vset.pattern.permute.xlu1 %v2224_v49  ;;  %2195 = vset.pattern.permute.xlu2 %v2224_v49  ;;  %v75_v17 = vperm.slane %v2773_v48, 2  ;;  %v74_v19 = vperm.slane %v2773_v48, 1  ;;  %v76_v28 = vperm.slane %v2773_v48, 3  ;;  %v508_v14 = vld [vmem:[%s3544_s3 + $0x8] sm:$0xff]  ;;  %v1867_v37 = vld [vmem:[#allocation2 + $0x98] sm:$0xf0] }
 0x101   :  { %v196_v21 = vpack.c.bf16 %v192_v59, %v191_v27  ;;  %v2116_v2 = vld [vmem:[#allocation2 + $0x2c] sm:$0xf0]  ;;  %v1811_v22 = vld [vmem:[#allocation2 + $0x30] sm:$0xf0]  ;;  %511 = vperm.xlu1 %2194, %v507_v41   ;;  %2196 = vset.pattern.permute.xlu0 %v2224_v49  ;;  %v73_v45 = vperm.slane %v2773_v48, 0  ;;  %v127_v5 = vperm.slane %v2716_v51, 2  ;;  %v1886_v27 = vor.u32 %v2131_v34, %v1883_v39 }
 0x102   :  { %466 = vst [vmem:[#allocation2 + $0x108] sm:$0xff] %v462_v20  ;;  %v1809_v16 = vld [vmem:[#allocation2 + $0x20] sm:$0xf]  ;;  %v2114_v4 = vld [vmem:[#allocation2 + $0x24] sm:$0xf]  ;;  %v83_v38 = vmul.f32 %v75_v17, %v65_v8  ;;  %v128_v40 = vperm.slane %v2716_v51, 3  ;;  %516 = vperm.xlu2 %2195, %v508_v14  }
 0x103   :  { %200 = vst [vmem:[#allocation2 + $0x58] sm:$0xff] %v196_v21  ;;  %v1810_v23 = vor.u32 %v2116_v2, %v1809_v16  ;;  %v1814_v50 = vor.u32 %v2114_v4, %v1811_v22  ;;  %v1870_v22 = vor.u32 %v2127_v18, %v1867_v37 }
 0x104   :  { %v47_v24 = vpop.permute.xlu1 %46 }
 0x105   :  { %v45_v35 = vpop.permute.xlu0 %44  ;;  %718 = vmatpush.bf16.msra.mxu0 %v1810_v23  ;;  %746 = vmatpush.bf16.msrb.mxu2 %v1814_v50  ;;  %v70_v47 = vsel %vm62_vm8, %v2745_v32, %v47_v24 }
 0x106   :  { %v67_v11 = vsel %vm62_vm8, %v45_v35, %v2725_v53  ;;  %v85_v6 = vmul.f32 %v73_v45, %v70_v47 }
 0x107   :  { %v82_v33 = vmul.f32 %v74_v19, %v67_v11 }
 0x109   :  { %v1929_v10 = vld [vmem:[#allocation2 + $0x108] sm:$0xf]  ;;  %v2143_v26 = vld [vmem:[#allocation2 + $0x10c] sm:$0xf] }
 0x10a   :  { %v2121_v36 = vld [vmem:[#allocation2 + $0x54] sm:$0xf0]  ;;  %v1930_v43 = vor.u32 %v2145_v9, %v1929_v10  ;;  %v1835_v11 = vld [vmem:[#allocation2 + $0x58] sm:$0xf0] }
 0x10b   :  { %v1834_v60 = vor.u32 %v2121_v36, %v1833_v31  ;;  %v1931_v31 = vld [vmem:[#allocation2 + $0x118] sm:$0xf0] }
 0x10c   :  { %v57_v29 = vpop.permute.xlu1 %56  ;;  %789 = vmatpush.bf16.msrb.mxu3 %v1930_v43  ;;  %v1934_v43 = vor.u32 %v2143_v26, %v1931_v31 }
 0x10d   :  { %v69_v54 = vsel %vm62_vm8, %v57_v29, %v45_v35  ;;  %v63_v55 = vsel %vm62_vm8, %v53_v61, %v57_v29  ;;  %773 = vmatpush.bf16.msra.mxu1 %v1834_v60  ;;  %v2795_v53 = vpop.permute.xlu0 %50  ;;  %v2123_v35 = vld [vmem:[#allocation2 + $0x6c] sm:$0xf]  ;;  %v1851_v61 = vld [vmem:[#allocation2 + $0x78] sm:$0xf0] }
 0x10e   :  { %v81_v57 = vmul.f32 %v73_v45, %v69_v54  ;;  %v84_v58 = vmul.f32 %v76_v28, %v63_v55  ;;  %v68_v0 = vsel %vm62_vm8, %v47_v24, %v2795_v53  ;;  %v1854_v10 = vor.u32 %v2123_v35, %v1851_v61 }
 0x10f   :  { %v86_v7 = vmul.f32 %v74_v19, %v68_v0  ;;  %1937 = vmatmul.msk.bf16.vlgmr.msrb.gmra.mxu3 %vm708_vm6, %v2711_v25 }
 0x110   :  { %796 = vmatpush.bf16.msra.mxu3 %v1918_v46  ;;  %v89_v15 = vpack.c.bf16 %v82_v33, %v81_v57  ;;  %v90_v13 = vpack.c.bf16 %v84_v58, %v83_v38  ;;  %v2119_v38 = vld [vmem:[#allocation2 + $0x4c] sm:$0xf] }
 0x111   :  { %v91_v1 = vpack.c.bf16 %v86_v7, %v85_v6  ;;  %v1838_v52 = vor.u32 %v2119_v38, %v1835_v11 }
 0x112   :  { %93 = vst [vmem:[#allocation2] sm:$0xff] %v89_v15 }
 0x113   :  { %94 = vst [vmem:[#allocation2 + $0x8] sm:$0xff] %v90_v13 }
 0x114   :  { %797 = vmatpush.bf16.msra.mxu3 %v1902_v63  ;;  %95 = vst [vmem:[#allocation2 + $0x10] sm:$0xff] %v91_v1  ;;  %v108_v59 = vpop.permute.xlu1 %107 }
 0x115   :  { %v115_v20 = vsel %vm113_vm7, %v108_v59, %v2734_v56  ;;  %v117_v21 = vsel %vm113_vm7, %v2643_v30, %v108_v59  ;;  %v106_v2 = vpop.permute.xlu0 %105 }
 0x116   :  { %v139_v16 = vmul.f32 %v127_v5, %v117_v21  ;;  %v140_v51 = vmul.f32 %v128_v40, %v115_v20  ;;  %v114_v4 = vsel %vm113_vm7, %v106_v2, %v2739_v62  ;;  %v116_v23 = vsel %vm113_vm7, %v2703_v44, %v106_v2  ;;  %v2109_v62 = vld [vmem:[%s3543_s2 + $0x4] sm:$0xf0] }
 0x117   :  { %v135_v50 = vmul.f32 %v127_v5, %v116_v23  ;;  %v136_v24 = vmul.f32 %v128_v40, %v114_v4  ;;  %v1786_v45 = vor.u32 %v2109_v62, %v1785_v42 }
 0x118   :  { %798 = vmatpush.bf16.msra.mxu3 %v1886_v27  ;;  %v144_v56 = vpack.c.bf16 %v140_v51, %v139_v16 }
 0x119   :  { %v142_v41 = vpack.c.bf16 %v136_v24, %v135_v50  ;;  %v1793_v30 = vld [vmem:[#allocation2] sm:$0xf]  ;;  %v2110_v49 = vld [vmem:[#allocation2 + $0x4] sm:$0xf] }
 0x11a   :  { %148 = vst [vmem:[#allocation2 + $0x38] sm:$0xff] %v144_v56  ;;  %v2111_v48 = vld [vmem:[#allocation2 + $0xc] sm:$0xf] }
 0x11b   :  { %146 = vst [vmem:[#allocation2 + $0x28] sm:$0xff] %v142_v41  ;;  %v2112_v44 = vld [vmem:[#allocation2 + $0xc] sm:$0xf0]  ;;  %v1795_v8 = vld [vmem:[#allocation2 + $0x10] sm:$0xf0] }
 0x11c   :  { %799 = vmatpush.bf16.msra.mxu3 %v1870_v22  ;;  %v1794_v9 = vor.u32 %v2112_v44, %v1793_v30  ;;  %v1798_v19 = vor.u32 %v2110_v49, %v1795_v8 }
 0x11d   :  { %v55_v36 = vpop.permute.xlu0 %54 }
 0x11e   :  { %v64_v60 = vsel %vm62_vm8, %v55_v36, %v2745_v32  ;;  %v66_v46 = vsel %vm62_vm8, %v2795_v53, %v55_v36  ;;  %719 = vmatpush.bf16.msra.mxu0 %v1794_v9  ;;  %747 = vmatpush.bf16.msrb.mxu2 %v1798_v19 }
 0x11f   :  { %v87_v47 = vmul.f32 %v75_v17, %v66_v46  ;;  %v88_v29 = vmul.f32 %v76_v28, %v64_v60  ;;  %v1801_v17 = vld [vmem:[#allocation2 + $0x8] sm:$0xf] }
 0x120   :  { %800 = vmatpush.bf16.msra.mxu3 %v1854_v10 }
 0x121   :  { %v92_v54 = vpack.c.bf16 %v88_v29, %v87_v47  ;;  %720 = vmatmul.bf16.vlgmr.msra.gmra.mxu0 %v1786_v45  ;;  %748 = vmatmul.bf16.vlgmr.msrb.gmra.mxu2 %v1786_v45  ;;  %v2117_v55 = vld [vmem:[#allocation2 + $0x34] sm:$0xf0]  ;;  %v1819_v32 = vld [vmem:[#allocation2 + $0x38] sm:$0xf0] }
 0x122   :  { %817 = vmatpush.bf16.msrb.mxu0 %v1934_v43  ;;  %v1817_v33 = vld [vmem:[#allocation2 + $0x28] sm:$0xf]  ;;  %v2115_v57 = vld [vmem:[#allocation2 + $0x2c] sm:$0xf] }
 0x123   :  { %96 = vst [vmem:[#allocation2 + $0x18] sm:$0xff] %v92_v54  ;;  %v1818_v53 = vor.u32 %v2117_v55, %v1817_v33  ;;  %v1822_v58 = vor.u32 %v2115_v57, %v1819_v32  ;;  %v2933_v33 = vld [vmem:[%s3542_s1 + $0x7] ss:$8 sm:$0xf] }
 0x124   :  { %801 = vmatpush.bf16.msra.mxu3 %v1838_v52  ;;  %v1166_v57 = vperm.slane %v2933_v33, 0 }
 0x125   :  { %774 = vmatpush.bf16.msra.mxu1 %v1818_v53  ;;  %v1167_v53 = vperm.slane %v2933_v33, 1 }
 0x128   :  { %802 = vmatpush.bf16.msra.mxu3 %v1822_v58 }
 0x12a   :  { %v2113_v0 = vld [vmem:[#allocation2 + $0x14] sm:$0xf0]  ;;  %v1803_v28 = vld [vmem:[#allocation2 + $0x18] sm:$0xf0] }
 0x12b   :  { %v1802_v3 = vor.u32 %v2113_v0, %v1801_v17  ;;  %v1806_v6 = vor.u32 %v2111_v48, %v1803_v28 }
 0x12d   :  { %775 = vmatpush.bf16.msra.mxu1 %v1802_v3  ;;  %803 = vmatpush.bf16.msra.mxu3 %v1806_v6 }
 0x130   :  { %776 = vmatmul.bf16.vlgmr.msra.gmra.mxu1 %v1786_v45  ;;  %804 = vmatmul.bf16.vlgmr.msra.gmra.mxu3 %v1786_v45 }
 0x131   :  { %1938 = vmatmul.msk.bf16.vlgmr.msrb.gmra.mxu0 %vm708_vm6, %v2711_v25 }
 0x15c   :  { %v517_v27 = vpop.permute.xlu2 %516 }
 0x16e   :  { %v763_v7 = vpop.f32.mrf.mxu3  ;;  %v735_v63 = vpop.f32.mrf.mxu2 }
 0x173   :  { %v512_v34 = vpop.permute.xlu1 %511 }
 0x176   :  { %v765_v15 = vpop.f32.mrf.mxu3  ;;  %v737_v13 = vpop.f32.mrf.mxu2 }
 0x192   :  { %v791_v39 = vpop.f32.mrf.mxu3 }
 0x19a   :  { %v793_v2 = vpop.f32.mrf.mxu3 }
 0x19e   :  { %v721_v1 = vpop.f32.mrf.mxu0 }
 0x19f   :  { %v722_v5 = vadd.f32 %v721_v1, %v512_v34 }
 0x1a1   :  { %v736_v14 = vadd.f32 %v735_v63, %v722_v5 }
 0x1a3   :  { %v824_v40 = vmax.f32 %v736_v14, 0.0 }
 0x1a4   :  { %v749_v18 = vpop.f32.mrf.mxu2 }
 0x1a5   :  { %v750_v37 = vadd.f32 %v749_v18, %v512_v34  ;;  %982 = vrot.lane.b32.xlu2 %v824_v40, %s2220_s13  ;;  %1140 = vrot.lane.b32.xlu0 %v824_v40, %s2216_s19 }
 0x1a6   :  { %v723_v59 = vpop.f32.mrf.mxu0 }
 0x1a7   :  { %v764_v20 = vadd.f32 %v763_v7, %v750_v37  ;;  %v724_v21 = vadd.f32 %v723_v59, %v517_v27  ;;  %v2962_v7 = vld [vmem:[%s3542_s1 + $0x6] ss:$8 sm:$0xf]  ;;  %v2991_v37 = vld [vmem:[%s3542_s1 + $0x5] ss:$8 sm:$0xf] }
 0x1a8   :  { %v1066_v59 = vperm.slane %v2991_v37, 0 }
 0x1a9   :  { %v825_v25 = vmax.f32 %v764_v20, 0.0  ;;  %v738_v51 = vadd.f32 %v737_v13, %v724_v21  ;;  %v1117_v13 = vperm.slane %v2962_v7, 1  ;;  %v1067_v20 = vperm.slane %v2991_v37, 1 }
 0x1ab   :  { %v1032_v22 = vpack.c.bf16 %v825_v25, %v824_v40  ;;  %v828_v35 = vmax.f32 %v738_v51, 0.0 }
 0x1ac   :  { %v751_v16 = vpop.f32.mrf.mxu2 }
 0x1ad   :  { %1036 = vst [vmem:[#allocation2 + $0x80] sm:$0xff] %v1032_v22  ;;  %v752_v4 = vadd.f32 %v751_v16, %v517_v27  ;;  %1190 = vrot.lane.b32.xlu2 %v824_v40, %s2219_s12  ;;  %1090 = vrot.lane.b32.xlu0 %v824_v40, %s2217_s26  ;;  %v777_v23 = vpop.f32.mrf.mxu1 }
 0x1ae   :  { %v778_v50 = vadd.f32 %v777_v23, %v512_v34  ;;  %v819_v41 = vpop.f32.mrf.mxu0 }
 0x1af   :  { %v766_v24 = vadd.f32 %v765_v15, %v752_v4  ;;  %v1116_v15 = vperm.slane %v2962_v7, 0 }
 0x1b0   :  { %v792_v56 = vadd.f32 %v791_v39, %v778_v50 }
 0x1b1   :  { %v2843_v61 = vmax.f32 %v766_v24, 0.0 }
 0x1b2   :  { %v2845_v30 = vmax.f32 %v792_v56, 0.0 }
 0x1b3   :  { %v1034_v49 = vpack.c.bf16 %v2843_v61, %v828_v35  ;;  %v805_v42 = vpop.f32.mrf.mxu3 }
 0x1b4   :  { %v806_v26 = vadd.f32 %v805_v42, %v512_v34  ;;  %1148 = vrot.lane.b32.xlu1 %v2845_v30, %s2216_s19  ;;  %v1278_v42 = vld [vmem:[%s3545_s5] sm:$0xff] }
 0x1b5   :  { %1038 = vst [vmem:[#allocation2 + $0x90] sm:$0xff] %v1034_v49  ;;  %1040 = vrot.lane.b32.xlu0 %v824_v40, %s2218_s11  ;;  %1144 = vrot.lane.b32.xlu2 %v825_v25, %s2216_s19  ;;  %v779_v62 = vpop.f32.mrf.mxu1  ;;  %v3044_v49 = vld [vmem:[%s3542_s1 + $0x20] ss:$8 sm:$0xf] }
 0x1b6   :  { %v820_v44 = vadd.f32 %v819_v41, %v806_v26  ;;  %v780_v8 = vadd.f32 %v779_v62, %v517_v27  ;;  %v821_v31 = vpop.f32.mrf.mxu0  ;;  %v1216_v26 = vperm.slane %v3044_v49, 0  ;;  %v1217_v62 = vperm.slane %v3044_v49, 1 }
 0x1b8   :  { %v2852_v10 = vmax.f32 %v820_v44, 0.0  ;;  %v794_v36 = vadd.f32 %v793_v2, %v780_v8 }
 0x1ba   :  { %v1033_v9 = vpack.c.bf16 %v2852_v10, %v2845_v30  ;;  %v2861_v11 = vmax.f32 %v794_v36, 0.0 }
 0x1bb   :  { %v807_v19 = vpop.f32.mrf.mxu3 }
 0x1bc   :  { %1037 = vst [vmem:[#allocation2 + $0x88] sm:$0xff] %v1033_v9  ;;  %v808_v43 = vadd.f32 %v807_v19, %v517_v27  ;;  %1098 = vrot.lane.b32.xlu1 %v2845_v30, %s2217_s26 }
 0x1bd   :  { %1198 = vrot.lane.b32.xlu0 %v2845_v30, %s2219_s12  ;;  %1094 = vrot.lane.b32.xlu2 %v825_v25, %s2217_s26 }
 0x1be   :  { %v822_v45 = vadd.f32 %v821_v31, %v808_v43 }
 0x1c0   :  { %v2863_v60 = vmax.f32 %v822_v45, 0.0 }
 0x1c2   :  { %v1035_v46 = vpack.c.bf16 %v2863_v60, %v2861_v11 }
 0x1c4   :  { %1039 = vst [vmem:[#allocation2 + $0x98] sm:$0xff] %v1035_v46  ;;  %1048 = vrot.lane.b32.xlu1 %v2845_v30, %s2218_s11  ;;  %v1279_v46 = vld [vmem:[%s3545_s5 + $0x8] sm:$0xff] }
 0x1c5   :  { %882 = vrot.lane.b32.xlu0 %v824_v40, %s2222_s17  ;;  %1044 = vrot.lane.b32.xlu2 %v825_v25, %s2218_s11 }
 0x1cc   :  { %932 = vrot.lane.b32.xlu1 %v824_v40, %s2221_s14 }
 0x1cd   :  { %832 = vrot.lane.b32.xlu0 %v824_v40, %s2223_s21  ;;  %886 = vrot.lane.b32.xlu2 %v825_v25, %s2222_s17 }
 0x1d4   :  { %986 = vrot.lane.b32.xlu1 %v825_v25, %s2220_s13 }
 0x1d5   :  { %936 = vrot.lane.b32.xlu0 %v825_v25, %s2221_s14  ;;  %836 = vrot.lane.b32.xlu2 %v825_v25, %s2223_s21 }
 0x1dc   :  { %1194 = vrot.lane.b32.xlu1 %v825_v25, %s2219_s12 }
 0x1dd   :  { %984 = vrot.lane.b32.xlu0 %v828_v35, %s2220_s13  ;;  %1150 = vrot.lane.b32.xlu2 %v2861_v11, %s2216_s19 }
 0x1e4   :  { %1142 = vrot.lane.b32.xlu1 %v828_v35, %s2216_s19 }
 0x1e5   :  { %1192 = vrot.lane.b32.xlu0 %v828_v35, %s2219_s12  ;;  %1100 = vrot.lane.b32.xlu2 %v2861_v11, %s2217_s26 }
 0x1ec   :  { %1092 = vrot.lane.b32.xlu1 %v828_v35, %s2217_s26 }
 0x1ed   :  { %1146 = vrot.lane.b32.xlu0 %v2843_v61, %s2216_s19  ;;  %1050 = vrot.lane.b32.xlu2 %v2861_v11, %s2218_s11 }
 0x1f4   :  { %1042 = vrot.lane.b32.xlu1 %v828_v35, %s2218_s11 }
 0x1f5   :  { %1096 = vrot.lane.b32.xlu0 %v2843_v61, %s2217_s26  ;;  %934 = vrot.lane.b32.xlu2 %v828_v35, %s2221_s14 }
 0x1fc   :  { %1200 = vrot.lane.b32.xlu1 %v2861_v11, %s2219_s12 }
 0x1fd   :  { %1046 = vrot.lane.b32.xlu0 %v2843_v61, %s2218_s11  ;;  %988 = vrot.lane.b32.xlu2 %v2843_v61, %s2220_s13 }
 0x1ff   :  { %v2900_v47 = vpop.permute.xlu2 %982 }
 0x204   :  { %884 = vrot.lane.b32.xlu1 %v828_v35, %s2222_s17 }
 0x205   :  { %1152 = vrot.lane.b32.xlu0 %v2852_v10, %s2216_s19  ;;  %1196 = vrot.lane.b32.xlu2 %v2843_v61, %s2219_s12 }
 0x207   :  { %v2907_v29 = vpop.permute.xlu2 %1190 }
 0x20c   :  { %834 = vrot.lane.b32.xlu1 %v828_v35, %s2223_s21 }
 0x20d   :  { %994 = vrot.lane.b32.xlu0 %v2852_v10, %s2220_s13  ;;  %1102 = vrot.lane.b32.xlu2 %v2852_v10, %s2217_s26 }
 0x20f   :  { %v1145_v38 = vpop.permute.xlu2 %1144 }
 0x214   :  { %938 = vrot.lane.b32.xlu1 %v2843_v61, %s2221_s14 }
 0x215   :  { %888 = vrot.lane.b32.xlu0 %v2843_v61, %s2222_s17  ;;  %944 = vrot.lane.b32.xlu2 %v2852_v10, %s2221_s14 }
 0x217   :  { %v2920_v52 = vpop.permute.xlu0 %1140  ;;  %v1095_v54 = vpop.permute.xlu2 %1094 }
 0x218   :  { %v1160_v58 = vsel %vm381_vm0, %v2920_v52, %v1145_v38 }
 0x219   :  { %v1174_v3 = vmul.f32 %v1166_v57, %v1160_v58 }
 0x21c   :  { %1052 = vrot.lane.b32.xlu1 %v2852_v10, %s2218_s11 }
 0x21d   :  { %838 = vrot.lane.b32.xlu0 %v2843_v61, %s2223_s21  ;;  %1054 = vrot.lane.b32.xlu2 %v2863_v60, %s2218_s11 }
 0x21f   :  { %v2928_v55 = vpop.permute.xlu0 %1090  ;;  %v1045_v32 = vpop.permute.xlu2 %1044 }
 0x220   :  { %v1110_v34 = vsel %vm329_vm1, %v2928_v55, %v1095_v54 }
 0x221   :  { %v1124_v40 = vmul.f32 %v1116_v15, %v1110_v34  ;;  %v1119_v34 = vperm.slane %v2962_v7, 3 }
 0x224   :  { %894 = vrot.lane.b32.xlu1 %v2852_v10, %s2222_s17 }
 0x225   :  { %1104 = vrot.lane.b32.xlu0 %v2863_v60, %s2217_s26  ;;  %896 = vrot.lane.b32.xlu2 %v2863_v60, %s2222_s17 }
 0x226   :  { %v2946_v17 = vpop.permute.xlu1 %1148 }
 0x227   :  { %v1158_v0 = vsel %vm381_vm0, %v1145_v38, %v2946_v17  ;;  %v2951_v48 = vpop.permute.xlu0 %1040  ;;  %v2953_v28 = vpop.permute.xlu2 %886 }
 0x228   :  { %v1175_v6 = vmul.f32 %v1167_v53, %v1158_v0  ;;  %v1060_v25 = vsel %vm277_vm2, %v2951_v48, %v1045_v32 }
 0x229   :  { %v1074_v51 = vmul.f32 %v1066_v59, %v1060_v25 }
 0x22a   :  { %v1182_v63 = vpack.c.bf16 %v1175_v6, %v1174_v3 }
 0x22c   :  { %1186 = vst [vmem:[#allocation2 + $0xe0] sm:$0xff] %v1182_v63  ;;  %1154 = vrot.lane.b32.xlu1 %v2863_v60, %s2216_s19  ;;  %v1118_v63 = vperm.slane %v2962_v7, 2 }
 0x22d   :  { %946 = vrot.lane.b32.xlu0 %v2863_v60, %s2221_s14  ;;  %846 = vrot.lane.b32.xlu2 %v2863_v60, %s2223_s21 }
 0x22e   :  { %v2975_v1 = vpop.permute.xlu1 %1098 }
 0x22f   :  { %v1108_v5 = vsel %vm329_vm1, %v1095_v54, %v2975_v1  ;;  %v2980_v39 = vpop.permute.xlu0 %1198  ;;  %v2982_v14 = vpop.permute.xlu2 %836 }
 0x230   :  { %v1125_v18 = vmul.f32 %v1117_v13, %v1108_v5 }
 0x232   :  { %v1132_v27 = vpack.c.bf16 %v1125_v18, %v1124_v40 }
 0x234   :  { %1136 = vst [vmem:[#allocation2 + $0xc0] sm:$0xff] %v1132_v27  ;;  %996 = vrot.lane.b32.xlu1 %v2863_v60, %s2220_s13 }
 0x235   :  { %990 = vrot.lane.b32.xlu0 %v2845_v30, %s2220_s13  ;;  %940 = vrot.lane.b32.xlu2 %v2845_v30, %s2221_s14 }
 0x236   :  { %v3004_v21 = vpop.permute.xlu1 %1048 }
 0x237   :  { %v1058_v2 = vsel %vm277_vm2, %v1045_v32, %v3004_v21  ;;  %v3009_v22 = vpop.permute.xlu0 %882  ;;  %v3011_v16 = vpop.permute.xlu2 %1150 }
 0x238   :  { %v1075_v4 = vmul.f32 %v1067_v20, %v1058_v2 }
 0x23a   :  { %v1082_v23 = vpack.c.bf16 %v1075_v4, %v1074_v51 }
 0x23c   :  { %1086 = vst [vmem:[#allocation2 + $0xa0] sm:$0xff] %v1082_v23  ;;  %844 = vrot.lane.b32.xlu1 %v2852_v10, %s2223_s21 }
 0x23d   :  { %942 = vrot.lane.b32.xlu0 %v2861_v11, %s2221_s14  ;;  %892 = vrot.lane.b32.xlu2 %v2861_v11, %s2222_s17 }
 0x23e   :  { %v3023_v50 = vpop.permute.xlu1 %932 }
 0x23f   :  { %v3025_v24 = vpop.permute.xlu0 %832  ;;  %v3027_v56 = vpop.permute.xlu2 %1100 }
 0x244   :  { %992 = vrot.lane.b32.xlu1 %v2861_v11, %s2220_s13 }
 0x245   :  { %840 = vrot.lane.b32.xlu0 %v2845_v30, %s2223_s21  ;;  %1202 = vrot.lane.b32.xlu2 %v2852_v10, %s2219_s12 }
 0x246   :  { %v3035_v35 = vpop.permute.xlu1 %986 }
 0x247   :  { %v3037_v61 = vpop.permute.xlu0 %936  ;;  %v3039_v41 = vpop.permute.xlu2 %1050 }
 0x24c   :  { %890 = vrot.lane.b32.xlu1 %v2845_v30, %s2222_s17 }
 0x24d   :  { %1204 = vrot.lane.b32.xlu0 %v2863_v60, %s2219_s12  ;;  %1282 = vperm.xlu2 %2195, %v1278_v42  }
 0x24e   :  { %v1195_v44 = vpop.permute.xlu1 %1194 }
 0x24f   :  { %v3055_v8 = vpop.permute.xlu0 %984  ;;  %v1208_v10 = vsel %vm433_vm3, %v1195_v44, %v2980_v39  ;;  %v1210_v9 = vsel %vm433_vm3, %v2907_v29, %v1195_v44  ;;  %v3063_v30 = vpop.permute.xlu2 %934 }
 0x250   :  { %v1224_v19 = vmul.f32 %v1216_v26, %v1210_v9  ;;  %v1225_v31 = vmul.f32 %v1217_v62, %v1208_v10 }
 0x252   :  { %v1232_v36 = vpack.c.bf16 %v1225_v31, %v1224_v19 }
 0x254   :  { %1236 = vst [vmem:[#allocation2 + $0x100] sm:$0xff] %v1232_v36  ;;  %842 = vrot.lane.b32.xlu1 %v2861_v11, %s2223_s21 }
 0x256   :  { %v3069_v43 = vpop.permute.xlu1 %1142 }
 0x257   :  { %v3071_v45 = vpop.permute.xlu0 %1192  ;;  %v3073_v60 = vpop.permute.xlu2 %988 }
 0x25c   :  { %1287 = vperm.xlu1 %2194, %v1279_v46  }
 0x25e   :  { %v3078_v38 = vpop.permute.xlu1 %1092 }
 0x25f   :  { %v1147_v54 = vpop.permute.xlu0 %1146  ;;  %v1197_v32 = vpop.permute.xlu2 %1196 }
 0x260   :  { %v1159_v58 = vsel %vm381_vm0, %v1147_v54, %v3011_v16  ;;  %v1161_v11 = vsel %vm381_vm0, %v3069_v43, %v1147_v54  ;;  %v952_v54 = vsel %vm165_vm5, %v3023_v50, %v3037_v61 }
 0x261   :  { %v1178_v0 = vmul.f32 %v1166_v57, %v1161_v11  ;;  %v1179_v3 = vmul.f32 %v1167_v53, %v1159_v58 }
 0x263   :  { %v1184_v6 = vpack.c.bf16 %v1179_v3, %v1178_v0 }
 0x265   :  { %1188 = vst [vmem:[#allocation2 + $0xf0] sm:$0xff] %v1184_v6 }
 0x266   :  { %v3092_v5 = vpop.permute.xlu1 %1042 }
 0x267   :  { %v1097_v40 = vpop.permute.xlu0 %1096  ;;  %v1103_v18 = vpop.permute.xlu2 %1102 }
 0x268   :  { %v1109_v27 = vsel %vm329_vm1, %v1097_v40, %v3027_v56  ;;  %v1111_v57 = vsel %vm329_vm1, %v3078_v38, %v1097_v40  ;;  %v1106_v53 = vsel %vm329_vm1, %v2975_v1, %v1103_v18  ;;  %v1112_v25 = vsel %vm329_vm1, %v1103_v18, %v2928_v55  ;;  %v3117_v1 = vld [vmem:[%s3542_s1 + $0x2] ss:$8 sm:$0xf] }
 0x269   :  { %v1128_v2 = vmul.f32 %v1116_v15, %v1111_v57  ;;  %v1129_v51 = vmul.f32 %v1117_v13, %v1109_v27  ;;  %v1126_v4 = vmul.f32 %v1118_v63, %v1106_v53  ;;  %v1127_v23 = vmul.f32 %v1119_v34, %v1112_v25  ;;  %v2068_v55 = vld [vmem:[#allocation2 + $0xe0] sm:$0xf]  ;;  %v2176_v13 = vld [vmem:[#allocation2 + $0xe4] sm:$0xf] }
 0x26a   :  { %v1211_v15 = vsel %vm433_vm3, %v3071_v45, %v1197_v32  ;;  %v959_v19 = vperm.slane %v3117_v1, 1  ;;  %v958_v46 = vperm.slane %v3117_v1, 0 }
 0x26b   :  { %v1134_v42 = vpack.c.bf16 %v1129_v51, %v1128_v2  ;;  %v1133_v44 = vpack.c.bf16 %v1127_v23, %v1126_v4  ;;  %v1228_v11 = vmul.f32 %v1216_v26, %v1211_v15  ;;  %v1168_v4 = vperm.slane %v2933_v33, 2  ;;  %v2052_v23 = vld [vmem:[#allocation2 + $0xc0] sm:$0xf] }
 0x26c   :  { %v2178_v10 = vld [vmem:[#allocation2 + $0xec] sm:$0xf0]  ;;  %v2070_v9 = vld [vmem:[#allocation2 + $0xf0] sm:$0xf0]  ;;  %v967_v27 = vmul.f32 %v959_v19, %v952_v54 }
 0x26d   :  { %1138 = vst [vmem:[#allocation2 + $0xd0] sm:$0xff] %v1134_v42  ;;  %v2069_v31 = vor.u32 %v2178_v10, %v2068_v55  ;;  %v2073_v36 = vor.u32 %v2176_v13, %v2070_v9  ;;  %v2172_v42 = vld [vmem:[#allocation2 + $0xc4] sm:$0xf]  ;;  %v1069_v10 = vperm.slane %v2991_v37, 3 }
 0x26e   :  { %1137 = vst [vmem:[#allocation2 + $0xc8] sm:$0xff] %v1133_v44  ;;  %v3128_v58 = vpop.permute.xlu1 %1200 }
 0x26f   :  { %v1047_v0 = vpop.permute.xlu0 %1046  ;;  %v1209_v3 = vsel %vm433_vm3, %v1197_v32, %v3128_v58  ;;  %1482 = vmatpush.bf16.msra.mxu2 %v2069_v31  ;;  %1510 = vmatpush.bf16.msra.mxu0 %v2073_v36  ;;  %v3133_v6 = vpop.permute.xlu2 %944 }
 0x270   :  { %v1059_v40 = vsel %vm277_vm2, %v1047_v0, %v3039_v41  ;;  %v1061_v18 = vsel %vm277_vm2, %v3092_v5, %v1047_v0  ;;  %v1229_v26 = vmul.f32 %v1217_v62, %v1209_v3  ;;  %v954_v32 = vsel %vm165_vm5, %v3133_v6, %v3023_v50  ;;  %v3174_v3 = vld [vmem:[%s3542_s1 + $0x3] ss:$8 sm:$0xf] }
 0x271   :  { %v1078_v57 = vmul.f32 %v1066_v59, %v1061_v18  ;;  %v1079_v53 = vmul.f32 %v1067_v20, %v1059_v40  ;;  %v966_v25 = vmul.f32 %v958_v46, %v954_v32  ;;  %v1169_v50 = vperm.slane %v2933_v33, 3  ;;  %v2036_v18 = vld [vmem:[#allocation2 + $0xa0] sm:$0xf] }
 0x272   :  { %v1234_v2 = vpack.c.bf16 %v1229_v26, %v1228_v11  ;;  %v1068_v20 = vperm.slane %v2991_v37, 2  ;;  %v2084_v26 = vld [vmem:[#allocation2 + $0x100] sm:$0xf] }
 0x273   :  { %v1084_v51 = vpack.c.bf16 %v1079_v53, %v1078_v57  ;;  %v974_v62 = vpack.c.bf16 %v967_v27, %v966_v25  ;;  %v2180_v57 = vld [vmem:[#allocation2 + $0x104] sm:$0xf] }
 0x274   :  { %1238 = vst [vmem:[#allocation2 + $0x110] sm:$0xff] %v1234_v2  ;;  %v2174_v44 = vld [vmem:[#allocation2 + $0xcc] sm:$0xf0]  ;;  %v2054_v55 = vld [vmem:[#allocation2 + $0xd0] sm:$0xf0] }
 0x275   :  { %1088 = vst [vmem:[#allocation2 + $0xb0] sm:$0xff] %v1084_v51  ;;  %v2053_v59 = vor.u32 %v2174_v44, %v2052_v23  ;;  %v2057_v15 = vor.u32 %v2172_v42, %v2054_v55  ;;  %v2168_v51 = vld [vmem:[#allocation2 + $0xa4] sm:$0xf]  ;;  %v1009_v42 = vperm.slane %v3174_v3, 1  ;;  %v1008_v44 = vperm.slane %v3174_v3, 0 }
 0x276   :  { %978 = vst [vmem:[#allocation2 + $0x40] sm:$0xff] %v974_v62  ;;  %v885_v13 = vpop.permute.xlu1 %884 }
 0x277   :  { %v1153_v9 = vpop.permute.xlu0 %1152  ;;  %1483 = vmatpush.bf16.msra.mxu2 %v2053_v59  ;;  %1511 = vmatpush.bf16.msra.mxu0 %v2057_v15  ;;  %v1055_v31 = vpop.permute.xlu2 %1054  ;;  %v1002_v15 = vsel %vm217_vm4, %v2900_v47, %v3035_v35 }
 0x278   :  { %v1156_v36 = vsel %vm381_vm0, %v2946_v17, %v1153_v9  ;;  %v1162_v54 = vsel %vm381_vm0, %v1153_v9, %v2920_v52  ;;  %v1057_v11 = vsel %vm277_vm2, %v3039_v41, %v1055_v31  ;;  %v1063_v0 = vsel %vm277_vm2, %v1055_v31, %v3092_v5  ;;  %v2166_v31 = vld [vmem:[#allocation2 + $0x8c] sm:$0xf0] }
 0x279   :  { %v1176_v17 = vmul.f32 %v1168_v4, %v1156_v36  ;;  %v1177_v40 = vmul.f32 %v1169_v50, %v1162_v54  ;;  %v1080_v52 = vmul.f32 %v1068_v20, %v1057_v11  ;;  %v1081_v41 = vmul.f32 %v1069_v10, %v1063_v0  ;;  %v2022_v36 = vld [vmem:[#allocation2 + $0x90] sm:$0xf0] }
 0x27b   :  { %v1183_v5 = vpack.c.bf16 %v1177_v40, %v1176_v17  ;;  %v1085_v32 = vpack.c.bf16 %v1081_v41, %v1080_v52  ;;  %v2182_v27 = vld [vmem:[#allocation2 + $0x10c] sm:$0xf0]  ;;  %v2086_v53 = vld [vmem:[#allocation2 + $0x110] sm:$0xf0]  ;;  %v2020_v17 = vld [vmem:[#allocation2 + $0x80] sm:$0xf]  ;;  %v1017_v52 = vmul.f32 %v1009_v42, %v1002_v15 }
 0x27c   :  { %v2170_v25 = vld [vmem:[#allocation2 + $0xac] sm:$0xf0]  ;;  %v2085_v2 = vor.u32 %v2182_v27, %v2084_v26  ;;  %v2038_v62 = vld [vmem:[#allocation2 + $0xb0] sm:$0xf0]  ;;  %v2089_v23 = vor.u32 %v2180_v57, %v2086_v53  ;;  %v2164_v40 = vld [vmem:[#allocation2 + $0x84] sm:$0xf] }
 0x27d   :  { %1187 = vst [vmem:[#allocation2 + $0xe8] sm:$0xff] %v1183_v5  ;;  %v2037_v55 = vor.u32 %v2170_v25, %v2036_v18  ;;  %v2041_v59 = vor.u32 %v2168_v51, %v2038_v62  ;;  %v2021_v18 = vor.u32 %v2166_v31, %v2020_v17  ;;  %v2025_v26 = vor.u32 %v2164_v40, %v2022_v36  ;;  %v2146_v36 = vld [vmem:[%s3546_s4 + $0x4] sm:$0xf] }
 0x27e   :  { %1089 = vst [vmem:[#allocation2 + $0xb8] sm:$0xff] %v1085_v32  ;;  %v835_v9 = vpop.permute.xlu1 %834  ;;  %1503 = vmatpush.bf16.msrb.mxu1 %v2085_v2  ;;  %v3205_v32 = vld [vmem:[%s3542_s1 + $0x1] ss:$8 sm:$0xf]  ;;  %v961_v31 = vperm.slane %v3117_v1, 3  ;;  %v960_v40 = vperm.slane %v3117_v1, 2 }
 0x27f   :  { %v3190_v54 = vpop.permute.xlu0 %994  ;;  %1484 = vmatpush.bf16.msra.mxu2 %v2037_v55  ;;  %1512 = vmatpush.bf16.msra.mxu0 %v2041_v59  ;;  %v3192_v11 = vpop.permute.xlu2 %896  ;;  %v909_v53 = vperm.slane %v3205_v32, 1  ;;  %v3221_v55 = vld [vmem:[%s3542_s1] ss:$8 sm:$0xf] }
 0x280   :  { %v1004_v0 = vsel %vm217_vm4, %v3190_v54, %v2900_v47  ;;  %v908_v47 = vperm.slane %v3205_v32, 0  ;;  %v905_v27 = vsel %vm113_vm7, %v3192_v11, %v885_v13  ;;  %v858_v15 = vperm.slane %v3221_v55, 0 }
 0x281   :  { %v1016_v41 = vmul.f32 %v1008_v44, %v1004_v0  ;;  %v860_v1 = vperm.slane %v3221_v55, 2 }
 0x282   :  { %1531 = vmatpush.bf16.msra.mxu1 %v2089_v23  ;;  %v920_v62 = vmul.f32 %v908_v47, %v905_v27 }
 0x283   :  { %v1024_v5 = vpack.c.bf16 %v1017_v52, %v1016_v41  ;;  %1485 = vmatpush.bf16.msra.mxu2 %v2021_v18  ;;  %1513 = vmatpush.bf16.msra.mxu0 %v2025_v26  ;;  %v859_v41 = vperm.slane %v3221_v55, 1 }
 0x285   :  { %1028 = vst [vmem:[#allocation2 + $0x60] sm:$0xff] %v1024_v5 }
 0x286   :  { %v3211_v57 = vpop.permute.xlu1 %938 }
 0x287   :  { %v889_v25 = vpop.permute.xlu0 %888  ;;  %v3214_v2 = vpop.permute.xlu2 %846  ;;  %v953_v7 = vsel %vm165_vm5, %v3063_v30, %v3211_v57 }
 0x288   :  { %v903_v51 = vsel %vm113_vm7, %v885_v13, %v889_v25  ;;  %v1950_v13 = vld [vmem:[%s3546_s4 + $0x8] sm:$0xf0]  ;;  %v855_v0 = vsel %vm62_vm8, %v3214_v2, %v835_v9 }
 0x289   :  { %v921_v23 = vmul.f32 %v909_v53, %v903_v51  ;;  %v3235_v52 = vor.u32 %v2146_v36, %v1950_v13  ;;  %v902_v36 = vsel %vm113_vm7, %v3009_v22, %v2953_v28 }
 0x28b   :  { %v926_v59 = vpack.c.bf16 %v921_v23, %v920_v62  ;;  %2098 = vmatmul.msk.bf16.vlgmr.msrb.gmra.mxu1 %vm708_vm6, %v3235_v52 }
 0x28d   :  { %930 = vst [vmem:[#allocation2 + $0x30] sm:$0xff] %v926_v59 }
 0x28e   :  { %v1053_v17 = vpop.permute.xlu1 %1052 }
 0x28f   :  { %v3238_v18 = vpop.permute.xlu0 %838  ;;  %v1056_v26 = vsel %vm277_vm2, %v3004_v21, %v1053_v17  ;;  %v1062_v5 = vsel %vm277_vm2, %v1053_v17, %v2951_v48  ;;  %v941_v27 = vpop.permute.xlu2 %940  ;;  %v870_v48 = vmul.f32 %v858_v15, %v855_v0  ;;  %v911_v0 = vperm.slane %v3205_v32, 3 }
 0x290   :  { %v853_v51 = vsel %vm62_vm8, %v835_v9, %v3238_v18  ;;  %v1076_v62 = vmul.f32 %v1068_v20, %v1056_v26  ;;  %v1077_v23 = vmul.f32 %v1069_v10, %v1062_v5  ;;  %v948_v59 = vsel %vm165_vm5, %v941_v27, %v3133_v6 }
 0x291   :  { %v871_v21 = vmul.f32 %v859_v41, %v853_v51  ;;  %v950_v20 = vsel %vm165_vm5, %v3037_v61, %v941_v27  ;;  %v969_v37 = vmul.f32 %v961_v31, %v948_v59  ;;  %v910_v17 = vperm.slane %v3205_v32, 2 }
 0x292   :  { %v1083_v10 = vpack.c.bf16 %v1077_v23, %v1076_v62  ;;  %v968_v6 = vmul.f32 %v960_v40, %v950_v20  ;;  %v917_v26 = vmul.f32 %v909_v53, %v902_v36 }
 0x293   :  { %v876_v9 = vpack.c.bf16 %v871_v21, %v870_v48 }
 0x294   :  { %1087 = vst [vmem:[#allocation2 + $0xa8] sm:$0xff] %v1083_v10  ;;  %v975_v13 = vpack.c.bf16 %v969_v37, %v968_v6 }
 0x295   :  { %880 = vst [vmem:[#allocation2 + $0x10] sm:$0xff] %v876_v9 }
 0x296   :  { %979 = vst [vmem:[#allocation2 + $0x48] sm:$0xff] %v975_v13  ;;  %v3274_v61 = vpop.permute.xlu1 %894 }
 0x297   :  { %v1105_v5 = vpop.permute.xlu0 %1104  ;;  %v904_v27 = vsel %vm113_vm7, %v3274_v61, %v3009_v22  ;;  %v893_v51 = vpop.permute.xlu2 %892 }
 0x298   :  { %v1107_v62 = vsel %vm329_vm1, %v3027_v56, %v1105_v5  ;;  %v1113_v23 = vsel %vm329_vm1, %v1105_v5, %v3078_v38  ;;  %v916_v59 = vmul.f32 %v908_v47, %v904_v27  ;;  %v899_v53 = vsel %vm113_vm7, %v893_v51, %v3192_v11 }
 0x299   :  { %v1130_v48 = vmul.f32 %v1118_v63, %v1107_v62  ;;  %v1131_v22 = vmul.f32 %v1119_v34, %v1113_v23  ;;  %v901_v21 = vsel %vm113_vm7, %v889_v25, %v893_v51  ;;  %v923_v56 = vmul.f32 %v911_v0, %v899_v53 }
 0x29a   :  { %v924_v20 = vpack.c.bf16 %v917_v26, %v916_v59  ;;  %v922_v38 = vmul.f32 %v910_v17, %v901_v21  ;;  %v1218_v11 = vperm.slane %v3044_v49, 2  ;;  %v1219_v34 = vperm.slane %v3044_v49, 3 }
 0x29b   :  { %v1135_v47 = vpack.c.bf16 %v1131_v22, %v1130_v48  ;;  %2099 = vmatmul.msk.bf16.vlgmr.msra.gmra.mxu1 %vm708_vm6, %v3235_v52 }
 0x29c   :  { %928 = vst [vmem:[#allocation2 + $0x20] sm:$0xff] %v924_v20  ;;  %v927_v37 = vpack.c.bf16 %v923_v56, %v922_v38  ;;  %v2076_v20 = vld [vmem:[#allocation2 + $0xe8] sm:$0xf] }
 0x29d   :  { %1139 = vst [vmem:[#allocation2 + $0xd8] sm:$0xff] %v1135_v47  ;;  %v2177_v47 = vld [vmem:[#allocation2 + $0xec] sm:$0xf] }
 0x29e   :  { %931 = vst [vmem:[#allocation2 + $0x38] sm:$0xff] %v927_v37  ;;  %v1155_v63 = vpop.permute.xlu1 %1154 }
 0x29f   :  { %v947_v25 = vpop.permute.xlu0 %946  ;;  %v1157_v10 = vsel %vm381_vm0, %v3011_v16, %v1155_v63  ;;  %v1163_v6 = vsel %vm381_vm0, %v1155_v63, %v3069_v43  ;;  %v1203_v9 = vpop.permute.xlu2 %1202  ;;  %v971_v16 = vmul.f32 %v959_v19, %v953_v7  ;;  %v1003_v19 = vsel %vm217_vm4, %v3055_v8, %v3073_v60 }
 0x2a0   :  { %v955_v36 = vsel %vm165_vm5, %v947_v25, %v3063_v30  ;;  %v1180_v13 = vmul.f32 %v1168_v4, %v1157_v10  ;;  %v1181_v26 = vmul.f32 %v1169_v50, %v1163_v6  ;;  %v1206_v5 = vsel %vm433_vm3, %v2980_v39, %v1203_v9  ;;  %v2060_v6 = vld [vmem:[#allocation2 + $0xc8] sm:$0xf] }
 0x2a1   :  { %v970_v43 = vmul.f32 %v958_v46, %v955_v36  ;;  %v1212_v30 = vsel %vm433_vm3, %v1203_v9, %v2907_v29  ;;  %v1226_v33 = vmul.f32 %v1218_v11, %v1206_v5  ;;  %v1010_v46 = vperm.slane %v3174_v3, 2  ;;  %v2173_v5 = vld [vmem:[#allocation2 + $0xcc] sm:$0xf] }
 0x2a2   :  { %v1185_v4 = vpack.c.bf16 %v1181_v26, %v1180_v13  ;;  %v1227_v39 = vmul.f32 %v1219_v34, %v1212_v30  ;;  %v1011_v29 = vperm.slane %v3174_v3, 3  ;;  %v1021_v59 = vmul.f32 %v1009_v42, %v1003_v19  ;;  %v2169_v19 = vld [vmem:[#allocation2 + $0xac] sm:$0xf]  ;;  %v2154_v3 = vld [vmem:[#allocation2 + $0x2c] sm:$0xf0] }
 0x2a3   :  { %v976_v50 = vpack.c.bf16 %v971_v16, %v970_v43 }
 0x2a4   :  { %1189 = vst [vmem:[#allocation2 + $0xf8] sm:$0xff] %v1185_v4  ;;  %v1233_v27 = vpack.c.bf16 %v1227_v39, %v1226_v33  ;;  %v2175_v7 = vld [vmem:[#allocation2 + $0xd4] sm:$0xf0]  ;;  %v2062_v63 = vld [vmem:[#allocation2 + $0xd8] sm:$0xf0] }
 0x2a5   :  { %980 = vst [vmem:[#allocation2 + $0x50] sm:$0xff] %v976_v50  ;;  %v2061_v26 = vor.u32 %v2175_v7, %v2060_v6  ;;  %v2065_v33 = vor.u32 %v2173_v5, %v2062_v63  ;;  %v2160_v50 = vld [vmem:[#allocation2 + $0x64] sm:$0xf]  ;;  %v1972_v5 = vld [vmem:[#allocation2 + $0x20] sm:$0xf] }
 0x2a6   :  { %1237 = vst [vmem:[#allocation2 + $0x108] sm:$0xff] %v1233_v27  ;;  %v3341_v51 = vpop.permute.xlu1 %996  ;;  %v2171_v27 = vld [vmem:[#allocation2 + $0xb4] sm:$0xf0] }
 0x2a7   :  { %v991_v62 = vpop.permute.xlu0 %990  ;;  %v1005_v23 = vsel %vm217_vm4, %v3341_v51, %v3055_v8 }
 0x2a8   :  { %v998_v53 = vsel %vm217_vm4, %v991_v62, %v3190_v54  ;;  %v1000_v48 = vsel %vm217_vm4, %v3035_v35, %v991_v62  ;;  %v1020_v22 = vmul.f32 %v1008_v44, %v1005_v23  ;;  %v852_v35 = vsel %vm62_vm8, %v3025_v24, %v2982_v14 }
 0x2a9   :  { %v1018_v21 = vmul.f32 %v1010_v46, %v1000_v48  ;;  %v1019_v8 = vmul.f32 %v1011_v29, %v998_v53  ;;  %v867_v9 = vmul.f32 %v859_v41, %v852_v35  ;;  %v2046_v48 = vld [vmem:[#allocation2 + $0xb8] sm:$0xf0] }
 0x2aa   :  { %v1026_v56 = vpack.c.bf16 %v1021_v59, %v1020_v22 }
 0x2ab   :  { %v1025_v42 = vpack.c.bf16 %v1019_v8, %v1018_v21  ;;  %v2179_v38 = vld [vmem:[#allocation2 + $0xf4] sm:$0xf0]  ;;  %v2078_v37 = vld [vmem:[#allocation2 + $0xf8] sm:$0xf0]  ;;  %v2049_v21 = vor.u32 %v2169_v19, %v2046_v48  ;;  %v1988_v8 = vld [vmem:[#allocation2 + $0x40] sm:$0xf] }
 0x2ac   :  { %1030 = vst [vmem:[#allocation2 + $0x70] sm:$0xff] %v1026_v56  ;;  %v2077_v54 = vor.u32 %v2179_v38, %v2076_v20  ;;  %v2081_v44 = vor.u32 %v2177_v47, %v2078_v37  ;;  %v2158_v59 = vld [vmem:[#allocation2 + $0x4c] sm:$0xf0]  ;;  %v2167_v38 = vld [vmem:[#allocation2 + $0x94] sm:$0xf0] }
 0x2ad   :  { %1029 = vst [vmem:[#allocation2 + $0x68] sm:$0xff] %v1025_v42  ;;  %v1989_v20 = vor.u32 %v2158_v59, %v1988_v8  ;;  %v2156_v42 = vld [vmem:[#allocation2 + $0x44] sm:$0xf]  ;;  %v2030_v47 = vld [vmem:[#allocation2 + $0x98] sm:$0xf0] }
 0x2ae   :  { %v845_v10 = vpop.permute.xlu1 %844  ;;  %1538 = vmatpush.bf16.msrb.mxu3 %v2077_v54  ;;  %1566 = vmatpush.bf16.msrb.mxu1 %v2081_v44  ;;  %v2181_v12 = vld [vmem:[#allocation2 + $0x10c] sm:$0xf] }
 0x2af   :  { %v943_v36 = vpop.permute.xlu0 %942  ;;  %v854_v13 = vsel %vm62_vm8, %v845_v10, %v3025_v24  ;;  %v2004_v24 = vld [vmem:[#allocation2 + $0x60] sm:$0xf] }
 0x2b0   :  { %v949_v16 = vsel %vm165_vm5, %v943_v36, %v947_v25  ;;  %v951_v43 = vsel %vm165_vm5, %v3211_v57, %v943_v36  ;;  %v866_v30 = vmul.f32 %v858_v15, %v854_v13  ;;  %v2044_v25 = vld [vmem:[#allocation2 + $0xa8] sm:$0xf]  ;;  %v2165_v36 = vld [vmem:[#allocation2 + $0x8c] sm:$0xf] }
 0x2b1   :  { %v972_v41 = vmul.f32 %v960_v40, %v951_v43  ;;  %v973_v4 = vmul.f32 %v961_v31, %v949_v16  ;;  %v1990_v40 = vld [vmem:[#allocation2 + $0x50] sm:$0xf0]  ;;  %v861_v31 = vperm.slane %v3221_v55, 3  ;;  %v2045_v22 = vor.u32 %v2171_v27, %v2044_v25  ;;  %v2152_v16 = vld [vmem:[#allocation2 + $0x24] sm:$0xf] }
 0x2b2   :  { %v874_v39 = vpack.c.bf16 %v867_v9, %v866_v30  ;;  %1539 = vmatpush.bf16.msrb.mxu3 %v2061_v26  ;;  %1567 = vmatpush.bf16.msrb.mxu1 %v2065_v33  ;;  %v1993_v44 = vor.u32 %v2156_v42, %v1990_v40  ;;  %v2028_v9 = vld [vmem:[#allocation2 + $0x88] sm:$0xf] }
 0x2b3   :  { %v977_v62 = vpack.c.bf16 %v973_v4, %v972_v41  ;;  %v2162_v57 = vld [vmem:[#allocation2 + $0x6c] sm:$0xf0]  ;;  %v2006_v23 = vld [vmem:[#allocation2 + $0x70] sm:$0xf0]  ;;  %v2029_v26 = vor.u32 %v2167_v38, %v2028_v9  ;;  %v2147_v25 = vld [vmem:[%s3546_s4 + $0x4] sm:$0xf0] }
 0x2b4   :  { %878 = vst [vmem:[#allocation2] sm:$0xff] %v874_v39  ;;  %v2005_v15 = vor.u32 %v2162_v57, %v2004_v24  ;;  %v2009_v53 = vor.u32 %v2160_v50, %v2006_v23  ;;  %v2150_v4 = vld [vmem:[#allocation2 + $0xc] sm:$0xf0]  ;;  %v1958_v39 = vld [vmem:[#allocation2 + $0x10] sm:$0xf0] }
 0x2b5   :  { %981 = vst [vmem:[#allocation2 + $0x58] sm:$0xff] %v977_v62  ;;  %v1948_v50 = vld [vmem:[%s3546_s4] sm:$0xf]  ;;  %v1996_v42 = vld [vmem:[#allocation2 + $0x48] sm:$0xf] }
 0x2b6   :  { %v993_v56 = vpop.permute.xlu1 %992  ;;  %1486 = vmatpush.bf16.msra.mxu2 %v2005_v15  ;;  %1514 = vmatpush.bf16.msra.mxu0 %v2009_v53  ;;  %v1949_v40 = vor.u32 %v2147_v25, %v1948_v50  ;;  %v2157_v38 = vld [vmem:[#allocation2 + $0x4c] sm:$0xf] }
 0x2b7   :  { %v841_v37 = vpop.permute.xlu0 %840  ;;  %v999_v35 = vsel %vm217_vm4, %v993_v56, %v3341_v51  ;;  %v1001_v54 = vsel %vm217_vm4, %v3073_v60, %v993_v56  ;;  %1540 = vmatpush.bf16.msrb.mxu3 %v2045_v22  ;;  %1568 = vmatpush.bf16.msrb.mxu1 %v2049_v21 }
 0x2b8   :  { %v848_v7 = vsel %vm62_vm8, %v841_v37, %v845_v10  ;;  %v850_v63 = vsel %vm62_vm8, %v2982_v14, %v841_v37  ;;  %v1022_v6 = vmul.f32 %v1010_v46, %v1001_v54  ;;  %v1023_v51 = vmul.f32 %v1011_v29, %v999_v35  ;;  %v1974_v46 = vld [vmem:[#allocation2 + $0x30] sm:$0xf0] }
 0x2b9   :  { %v868_v60 = vmul.f32 %v860_v1, %v850_v63  ;;  %v869_v13 = vmul.f32 %v861_v31, %v848_v7  ;;  %v2033_v10 = vor.u32 %v2165_v36, %v2030_v47  ;;  %v1973_v29 = vor.u32 %v2154_v3, %v1972_v5  ;;  %v2155_v7 = vld [vmem:[#allocation2 + $0x34] sm:$0xf0]  ;;  %v2092_v63 = vld [vmem:[#allocation2 + $0x108] sm:$0xf] }
 0x2ba   :  { %v1027_v43 = vpack.c.bf16 %v1023_v51, %v1022_v6  ;;  %1487 = vmatpush.bf16.msra.mxu2 %v1989_v20  ;;  %1515 = vmatpush.bf16.msra.mxu0 %v1993_v44  ;;  %v1977_v30 = vor.u32 %v2152_v16, %v1974_v46 }
 0x2bb   :  { %v875_v14 = vpack.c.bf16 %v869_v13, %v868_v60  ;;  %1541 = vmatpush.bf16.msrb.mxu3 %v2029_v26  ;;  %1569 = vmatpush.bf16.msrb.mxu1 %v2033_v10  ;;  %v1956_v33 = vld [vmem:[#allocation2] sm:$0xf]  ;;  %v2148_v41 = vld [vmem:[#allocation2 + $0x4] sm:$0xf] }
 0x2bc   :  { %1031 = vst [vmem:[#allocation2 + $0x78] sm:$0xff] %v1027_v43  ;;  %v1957_v57 = vor.u32 %v2150_v4, %v1956_v33  ;;  %v1961_v23 = vor.u32 %v2148_v41, %v1958_v39  ;;  %v2159_v32 = vld [vmem:[#allocation2 + $0x54] sm:$0xf0] }
 0x2bd   :  { %879 = vst [vmem:[#allocation2 + $0x8] sm:$0xff] %v875_v14  ;;  %v1997_v35 = vor.u32 %v2159_v32, %v1996_v42  ;;  %v1646_v42 = vld [vmem:[%s3547_s9] sm:$0xff] }
 0x2be   :  { %v891_v24 = vpop.permute.xlu1 %890  ;;  %1488 = vmatpush.bf16.msra.mxu2 %v1973_v29  ;;  %1516 = vmatpush.bf16.msra.mxu0 %v1977_v30  ;;  %v1283_v29 = vpop.permute.xlu2 %1282 }
 0x2bf   :  { %v1205_v27 = vpop.permute.xlu0 %1204  ;;  %v898_v19 = vsel %vm113_vm7, %v891_v24, %v3274_v61  ;;  %v900_v62 = vsel %vm113_vm7, %v2953_v28, %v891_v24 }
 0x2c0   :  { %v1207_v59 = vsel %vm433_vm3, %v3128_v58, %v1205_v27  ;;  %v1213_v15 = vsel %vm433_vm3, %v1205_v27, %v3071_v45  ;;  %v918_v53 = vmul.f32 %v910_v17, %v900_v62  ;;  %v919_v61 = vmul.f32 %v911_v0, %v898_v19  ;;  %v2012_v58 = vld [vmem:[#allocation2 + $0x68] sm:$0xf]  ;;  %v2161_v45 = vld [vmem:[#allocation2 + $0x6c] sm:$0xf]  ;;  %v1998_v0 = vld [vmem:[#allocation2 + $0x58] sm:$0xf0] }
 0x2c1   :  { %v1230_v48 = vmul.f32 %v1218_v11, %v1207_v59  ;;  %v1231_v28 = vmul.f32 %v1219_v34, %v1213_v15  ;;  %v2001_v54 = vor.u32 %v2157_v38, %v1998_v0 }
 0x2c2   :  { %v925_v22 = vpack.c.bf16 %v919_v61, %v918_v53  ;;  %1489 = vmatpush.bf16.msra.mxu2 %v1957_v57  ;;  %1517 = vmatpush.bf16.msra.mxu0 %v1961_v23 }
 0x2c3   :  { %v1235_v21 = vpack.c.bf16 %v1231_v28, %v1230_v48  ;;  %v2163_v8 = vld [vmem:[#allocation2 + $0x74] sm:$0xf0]  ;;  %v2014_v56 = vld [vmem:[#allocation2 + $0x78] sm:$0xf0] }
 0x2c4   :  { %929 = vst [vmem:[#allocation2 + $0x28] sm:$0xff] %v925_v22  ;;  %v2013_v17 = vor.u32 %v2163_v8, %v2012_v58  ;;  %v2017_v20 = vor.u32 %v2161_v45, %v2014_v56  ;;  %v1964_v55 = vld [vmem:[#allocation2 + $0x8] sm:$0xf]  ;;  %v2149_v26 = vld [vmem:[#allocation2 + $0xc] sm:$0xf] }
 0x2c5   :  { %1239 = vst [vmem:[#allocation2 + $0x118] sm:$0xff] %v1235_v21  ;;  %1490 = vmatmul.bf16.vlgmr.msra.gmra.mxu2 %v1949_v40  ;;  %1518 = vmatmul.bf16.vlgmr.msra.gmra.mxu0 %v1949_v40 }
 0x2c6   :  { %v843_v11 = vpop.permute.xlu1 %842  ;;  %1542 = vmatpush.bf16.msrb.mxu3 %v2013_v17  ;;  %1570 = vmatpush.bf16.msrb.mxu1 %v2017_v20 }
 0x2c7   :  { %v849_v49 = vsel %vm62_vm8, %v843_v11, %v3214_v2  ;;  %v851_v34 = vsel %vm62_vm8, %v3238_v18, %v843_v11  ;;  %v1982_v2 = vld [vmem:[#allocation2 + $0x38] sm:$0xf0] }
 0x2c8   :  { %v872_v47 = vmul.f32 %v860_v1, %v851_v34  ;;  %v873_v37 = vmul.f32 %v861_v31, %v849_v49  ;;  %v1647_v34 = vld [vmem:[%s3547_s9 + $0x8] sm:$0xff] }
 0x2ca   :  { %v877_v44 = vpack.c.bf16 %v873_v37, %v872_v47  ;;  %1543 = vmatpush.bf16.msrb.mxu3 %v1997_v35  ;;  %1571 = vmatpush.bf16.msrb.mxu1 %v2001_v54  ;;  %v1614_v47 = vld [vmem:[%s3548_s7] sm:$0xf] }
 0x2cb   :  { %v1980_v6 = vld [vmem:[#allocation2 + $0x28] sm:$0xf]  ;;  %v2153_v51 = vld [vmem:[#allocation2 + $0x2c] sm:$0xf] }
 0x2cc   :  { %881 = vst [vmem:[#allocation2 + $0x18] sm:$0xff] %v877_v44  ;;  %v1981_v18 = vor.u32 %v2155_v7, %v1980_v6  ;;  %v2183_v9 = vld [vmem:[#allocation2 + $0x114] sm:$0xf0]  ;;  %v1985_v36 = vor.u32 %v2153_v51, %v1982_v2  ;;  %v2094_v60 = vld [vmem:[#allocation2 + $0x118] sm:$0xf0] }
 0x2cd   :  { %v2093_v1 = vor.u32 %v2183_v9, %v2092_v63  ;;  %v2097_v13 = vor.u32 %v2181_v12, %v2094_v60  ;;  %v1613_v51 = vld [vmem:[%s3549_s6] sm:$0xf] }
 0x2ce   :  { %1544 = vmatpush.bf16.msrb.mxu3 %v1981_v18  ;;  %1572 = vmatpush.bf16.msrb.mxu1 %v1985_v36  ;;  %v1288_v50 = vpop.permute.xlu1 %1287 }
 0x2cf   :  { %1559 = vmatpush.bf16.msrb.mxu2 %v2093_v1  ;;  %1587 = vmatpush.bf16.msrb.mxu0 %v2097_v13  ;;  %v1644_v1 = vld [vmem:[%s3550_s8] sm:$0xff]  ;;  %v1645_v13 = vld [vmem:[%s3550_s8 + $0x8] sm:$0xff] }
 0x2d3   :  { %v2151_v31 = vld [vmem:[#allocation2 + $0x14] sm:$0xf0]  ;;  %v1966_v10 = vld [vmem:[#allocation2 + $0x18] sm:$0xf0] }
 0x2d4   :  { %v1965_v5 = vor.u32 %v2151_v31, %v1964_v55  ;;  %v1969_v16 = vor.u32 %v2149_v26, %v1966_v10  ;;  %v2225_v26 = vmov 1  }
 0x2d5   :  { %2100 = vmatmul.msk.bf16.vlgmr.msrb.gmra.mxu2 %vm708_vm6, %v3235_v52  ;;  %2101 = vmatmul.msk.bf16.vlgmr.msrb.gmra.mxu0 %vm708_vm6, %v3235_v52 }
 0x2d6   :  { %1545 = vmatpush.bf16.msrb.mxu3 %v1965_v5  ;;  %1573 = vmatpush.bf16.msrb.mxu1 %v1969_v16 }
 0x2d9   :  { %1546 = vmatmul.bf16.vlgmr.msrb.gmra.mxu3 %v1949_v40  ;;  %1574 = vmatmul.bf16.vlgmr.msrb.gmra.mxu1 %v1949_v40 }
 0x308   :  { %v1505_v43 = vpop.f32.mrf.mxu1 }
 0x310   :  { %v1507_v14 = vpop.f32.mrf.mxu1 }
 0x318   :  { %v1533_v46 = vpop.f32.mrf.mxu1 }
 0x320   :  { %v1535_v25 = vpop.f32.mrf.mxu1 }
 0x342   :  { %v1519_v3 = vpop.f32.mrf.mxu0 }
 0x343   :  { %v1520_v30 = vadd.f32 %v1519_v3, %v1283_v29 }
 0x345   :  { %v3442_v4 = vadd.f32 %v1533_v46, %v1520_v30 }
 0x348   :  { %v1491_v33 = vpop.f32.mrf.mxu2 }
 0x349   :  { %v1492_v41 = vadd.f32 %v1491_v33, %v1283_v29 }
 0x34a   :  { %v1521_v39 = vpop.f32.mrf.mxu0 }
 0x34b   :  { %v3444_v24 = vadd.f32 %v1505_v43, %v1492_v41  ;;  %v1522_v27 = vadd.f32 %v1521_v39, %v1288_v50 }
 0x34d   :  { %v1594_v52 = vadd.f32 %v3442_v4, %v3444_v24  ;;  %v3448_v57 = vadd.f32 %v1535_v25, %v1522_v27 }
 0x34f   :  { %1595 = vadd.xlane.f32.xlu2 %v1594_v52 }
 0x350   :  { %v1493_v19 = vpop.f32.mrf.mxu2 }
 0x351   :  { %v1494_v62 = vadd.f32 %v1493_v19, %v1288_v50 }
 0x352   :  { %v1589_v61 = vpop.f32.mrf.mxu0 }
 0x353   :  { %v3450_v23 = vadd.f32 %v1507_v14, %v1494_v62 }
 0x355   :  { %v1597_v59 = vadd.f32 %v3448_v57, %v3450_v23 }
 0x356   :  { %v1575_v15 = vpop.f32.mrf.mxu1 }
 0x357   :  { %1598 = vadd.xlane.f32.xlu0 %v1597_v59  ;;  %v1576_v53 = vadd.f32 %v1575_v15, %v1283_v29 }
 0x358   :  { %v1561_v48 = vpop.f32.mrf.mxu2 }
 0x359   :  { %v3454_v22 = vadd.f32 %v1589_v61, %v1576_v53 }
 0x35a   :  { %v1591_v20 = vpop.f32.mrf.mxu0 }
 0x35c   :  { %v1547_v28 = vpop.f32.mrf.mxu3 }
 0x35d   :  { %v1548_v40 = vadd.f32 %v1547_v28, %v1283_v29 }
 0x35e   :  { %v1577_v21 = vpop.f32.mrf.mxu1 }
 0x35f   :  { %v3456_v58 = vadd.f32 %v1561_v48, %v1548_v40  ;;  %v1578_v45 = vadd.f32 %v1577_v21, %v1288_v50 }
 0x360   :  { %v1563_v32 = vpop.f32.mrf.mxu2 }
 0x361   :  { %v1602_v8 = vadd.f32 %v3454_v22, %v3456_v58  ;;  %v3460_v0 = vadd.f32 %v1591_v20, %v1578_v45 }
 0x363   :  { %1603 = vadd.xlane.f32.xlu2 %v1602_v8 }
 0x364   :  { %v1549_v56 = vpop.f32.mrf.mxu3 }
 0x365   :  { %v1550_v17 = vadd.f32 %v1549_v56, %v1288_v50 }
 0x367   :  { %v3462_v11 = vadd.f32 %v1563_v32, %v1550_v17 }
 0x369   :  { %v1605_v49 = vadd.f32 %v3460_v0, %v3462_v11 }
 0x36b   :  { %1606 = vadd.xlane.f32.xlu1 %v1605_v49  ;;  %1617 = vperm.xlu0 %2196, %v1614_v47  }
 0x373   :  { %2199 = vset.pattern.permute.xlu0 %v2225_v26 }
 0x37b   :  { %1655 = vperm.xlu2 %2195, %v1647_v34   ;;  %v2208_v34 = vld [vmem:[%s3541_s0 + $0x20] sm:$0xff] }
 0x384   :  { %1650 = vperm.xlu1 %2194, %v1646_v42  }
 0x3c2   :  { %v1596_v38 = vpop.xlane.xlu2 %1595 }
 0x3c3   :  { %v1600_v2 = vmul.f32 0.00390625, %v1596_v38  ;;  %v2209_v38 = vld [vmem:[%s3541_s0 + $0x28] sm:$0xff] }
 0x3ca   :  { %v1599_v37 = vpop.xlane.xlu0 %1598 }
 0x3cb   :  { %v1601_v44 = vmul.f32 0.00390625, %v1599_v37 }
 0x3d6   :  { %v1604_v35 = vpop.xlane.xlu2 %1603 }
 0x3d7   :  { %v1608_v7 = vmul.f32 0.00390625, %v1604_v35  ;;  %v2210_v35 = vld [vmem:[%s3541_s0 + $0x30] sm:$0xff] }
 0x3d9   :  { %v1611_v12 = vsel %vm1610_vm9, %v1600_v2, %v1608_v7  ;;  %v2212_v2 = vld [vmem:[%s3541_s0] sm:$0xff] }
 0x3dd   :  { %v1618_v18 = vpop.permute.xlu0 %1617 }
 0x3de   :  { %v1607_v54 = vpop.xlane.xlu1 %1606  ;;  %v1656_v16 = vpop.permute.xlu2 %1655 }
 0x3df   :  { %v1609_v63 = vmul.f32 0.00390625, %v1607_v54 }
 0x3e1   :  { %v1612_v6 = vsel %vm1610_vm9, %v1601_v44, %v1609_v63  ;;  %v2211_v44 = vld [vmem:[%s3541_s0 + $0x38] sm:$0xff] }
 0x3e2   :  { %1637 = vmatpush.msra.mxu2 %v1612_v6 }
 0x3e4   :  { %1638 = vmatpush.msra.mxu2 %v1611_v12 }
 0x3e5   :  { %2102 = vmatmul.msk.f32.vlgmr.msra.gmra.mxu2 %vm708_vm6, %v1613_v51  ;;  %v2213_v51 = vld [vmem:[%s3541_s0 + $0x8] sm:$0xff] }
 0x3f6   :  { %v1651_v55 = vpop.permute.xlu1 %1650 }
 0x468   :  { %v1640_v9 = vpop.f32.mrf.mxu2 }
 0x469   :  { %v1641_v36 = vadd.f32 %v1640_v9, %v1618_v18  ;;  %v2214_v9 = vld [vmem:[%s3541_s0 + $0x10] sm:$0xff] }
 0x46b   :  { %v1643_v60 = vmax.f32 %v1641_v36, 0.0 }
 0x46d   :  { %2103 = vmatpush.msk.msra.mxu3 %vm1665_vm10, %v1643_v60  ;;  %v2215_v60 = vld [vmem:[%s3541_s0 + $0x18] sm:$0xff] }
 0x46e   :  { %2104 = vmatmul.msk.f32.vlgmr.msra.gmra.mxu3 %vm1658_vm11, %v1644_v1 }
 0x476   :  { %2105 = vmatmul.msk.f32.gmra.mxu3 %vm1658_vm11, %v1645_v13 }
 0x4f1   :  { %v1686_v31 = vpop.f32.mrf.mxu3 }
 0x4f2   :  { %v1687_v10 = vadd.f32 %v1686_v31, %v1651_v55 }
 0x4f4   :  { %v2106_v5 = vmul.f32 -1.442695, %v1687_v10 }
 0x4f6   :  { %2200 = vpow2.f32 %v2106_v5 }
 0x4f9   :  { %v1689_v43 = vpop.f32.mrf.mxu3 }
 0x4fa   :  { %v1690_v14 = vadd.f32 %v1689_v43, %v1656_v16 }
 0x4fc   :  { %v2201_v3 = vpop.eup %2200  ;;  %v2107_v46 = vmul.f32 -1.442695, %v1690_v14 }
 0x4fd   :  { %v1698_v29 = vadd.f32 1.0, %v2201_v3 }
 0x4fe   :  { %2202 = vpow2.f32 %v2107_v46 }
 0x4ff   :  { %2204 = vrcp.f32 %v1698_v29  ;;  %v1711_v50 = vand.u32 2147483648, %v1698_v29  ;;  %v1709_v27 = vand.u32 2147483647, %v1698_v29  ;;  %vm1705_vm13 = vweird.f32 %v1698_v29 }
 0x501   :  { %v1712_v59 = vor.u32 1.1754944e-38, %v1711_v50  ;;  %vm1710_vm15 = vcmp.eq.f32.partialorder %v1709_v27, 8.507059e+37 }
 0x504   :  { %v2203_v30 = vpop.eup %2202 }
 0x505   :  { %v2205_v33 = vpop.eup %2204  ;;  %v1699_v41 = vadd.f32 1.0, %v2203_v30 }
 0x506   :  { %v1701_v39 = vmul.f32 %v2205_v33, %v1698_v29  ;;  %vm1706_vm12 = vweird.f32 %v2205_v33 }
 0x507   :  { %2206 = vrcp.f32 %v1699_v41  ;;  %vm1707_vm14 = vmor %vm1705_vm13, %vm1706_vm12  ;;  %v1726_v28 = vand.u32 2147483648, %v1699_v41  ;;  %v1724_v21 = vand.u32 2147483647, %v1699_v41  ;;  %vm1720_vm1 = vweird.f32 %v1699_v41 }
 0x508   :  { %v1702_v52 = vsub.f32 1.0, %v1701_v39 }
 0x509   :  { %v1727_v45 = vor.u32 1.1754944e-38, %v1726_v28  ;;  %vm1725_vm3 = vcmp.eq.f32.partialorder %v1724_v21, 8.507059e+37 }
 0x50a   :  { %v1703_v25 = vmul.f32 %v2205_v33, %v1702_v52 }
 0x50c   :  { %v1704_v19 = vadd.f32 %v2205_v33, %v1703_v25 }
 0x50d   :  { %v2207_v62 = vpop.eup %2206 }
 0x50e   :  { %v1708_v15 = vsel %vm1707_vm14, %v2205_v33, %v1704_v19  ;;  %v1716_v53 = vmul.f32 %v2207_v62, %v1699_v41  ;;  %vm1721_vm0 = vweird.f32 %v2207_v62 }
 0x50f   :  { %v1713_v61 = vsel %vm1710_vm15, %v1712_v59, %v1708_v15  ;;  %vm1722_vm2 = vmor %vm1720_vm1, %vm1721_vm0 }
 0x510   :  { %1732 = vperm.xlu1 %2194, %v1713_v61   ;;  %v1717_v48 = vsub.f32 1.0, %v1716_v53 }
 0x512   :  { %v1718_v40 = vmul.f32 %v2207_v62, %v1717_v48 }
 0x514   :  { %v1719_v8 = vadd.f32 %v2207_v62, %v1718_v40 }
 0x516   :  { %v1723_v56 = vsel %vm1722_vm2, %v2207_v62, %v1719_v8 }
 0x517   :  { %v1728_v17 = vsel %vm1725_vm3, %v1727_v45, %v1723_v56 }
 0x518   :  { %2197 = vset.pattern.permute.xlu1 %v2225_v26  ;;  %1737 = vperm.xlu2 %2195, %v1728_v17  }
 0x519   :  { %1753 = vperm.xlu1 %2197, %v1713_v61  }
 0x520   :  { %2198 = vset.pattern.permute.xlu2 %v2225_v26 }
 0x521   :  { %1757 = vperm.xlu2 %2198, %v1728_v17  }
 0x572   :  { %v1738_v20 = vpop.permute.xlu2 %1737 }
 0x573   :  { %v1742_v32 = vmul.f32 %v1738_v20, %v3450_v23  ;;  %v1743_v49 = vmul.f32 %v1738_v20, %v3448_v57 }
 0x575   :  { %v1746_v42 = vadd.f32 %v2208_v34, %v1742_v32  ;;  %v1747_v47 = vadd.f32 %v2209_v38, %v1743_v49 }
 0x577   :  { %1750 = vst [vmem:[%s3551_s10 + $0x20] sm:$0xff] %v1746_v42 }
 0x578   :  { %1751 = vst [vmem:[%s3551_s10 + $0x28] sm:$0xff] %v1747_v47 }
 0x57b   :  { %v1758_v23 = vpop.permute.xlu2 %1757 }
 0x57c   :  { %v1762_v57 = vmul.f32 %v1758_v23, %v3462_v11  ;;  %v1763_v37 = vmul.f32 %v1758_v23, %v3460_v0 }
 0x57e   :  { %v1766_v54 = vadd.f32 %v2210_v35, %v1762_v57  ;;  %v1767_v7 = vadd.f32 %v2211_v44, %v1763_v37 }
 0x580   :  { %1770 = vst [vmem:[%s3551_s10 + $0x30] sm:$0xff] %v1766_v54 }
 0x581   :  { %1771 = vst [vmem:[%s3551_s10 + $0x38] sm:$0xff] %v1767_v7 }
 0x582   :  { %v1733_v11 = vpop.permute.xlu1 %1732 }
 0x583   :  { %v1740_v0 = vmul.f32 %v1733_v11, %v3444_v24  ;;  %v1741_v63 = vmul.f32 %v1733_v11, %v3442_v4 }
 0x585   :  { %v1744_v6 = vadd.f32 %v2212_v2, %v1740_v0  ;;  %v1745_v12 = vadd.f32 %v2213_v51, %v1741_v63 }
 0x587   :  { %1748 = vst [vmem:[%s3551_s10] sm:$0xff] %v1744_v6 }
 0x588   :  { %1749 = vst [vmem:[%s3551_s10 + $0x8] sm:$0xff] %v1745_v12 }
 0x58b   :  { %v1754_v24 = vpop.permute.xlu1 %1753 }
 0x58c   :  { %v1760_v4 = vmul.f32 %v1754_v24, %v3456_v58  ;;  %v1761_v18 = vmul.f32 %v1754_v24, %v3454_v22 }
 0x58e   :  { %v1764_v36 = vadd.f32 %v2214_v9, %v1760_v4  ;;  %v1765_v1 = vadd.f32 %v2215_v60, %v1761_v18 }
 0x590   :  { %1768 = vst [vmem:[%s3551_s10 + $0x10] sm:$0xff] %v1764_v36 }
 0x591   :  { %1769 = vst [vmem:[%s3551_s10 + $0x18] sm:$0xff] %v1765_v1 }

</bundles_post_ra>
